<compile_context>
chip_gen: v7x
topology: tpu7x:2x2x1
jax: 0.10.0
libtpu: 0.0.40
codegen_flags: <defaults>
</compile_context>

<pallas_src>
import functools

import jax
import jax.numpy as jnp
from jax.experimental import pallas as pl
from jax.experimental.pallas import tpu as pltpu

C_PAD = 128                 # lane-dense channel slab for all feature maps / grams
LAYER_CHANNELS = (8, 16)    # true output channels of the synthetic VGG blocks


# ----------------------- small helpers -----------------------

def _round_up(n, m):
    return ((n + m - 1) // m) * m


def _tpu_generation_config():
    """Derive tiling knobs from VMEM capacity: v7x = 64 MiB/TC, v5e/v6e = 128 MiB."""
    try:
        phys = int(pltpu.get_tpu_info().vmem_capacity_bytes)
    except Exception:
        phys = 64 << 20                               # conservative default (v7x-like)
    small = phys <= (64 << 20)
    return {
        "vmem_ceiling": (48 << 20) if small else (100 << 20),
        "row_target": 256 if small else 1024,         # conv GEMM rows per grid step
        "k_target": 512 if small else 2048,           # gram HW-contraction rows per grid step
    }


_CFG = _tpu_generation_config()


def _vmem_limit(*block_bytes):
    """Explicit scoped-VMEM budget: double-buffered blocks + slack, clamped per generation."""
    need = 2 * sum(int(b) for b in block_bytes) + (1 << 20)
    return int(min(_CFG["vmem_ceiling"], max(8 << 20, need)))


# ----------------------- Pallas kernels -----------------------

def _conv3x3_bias_relu_kernel(x_ref, w_ref, b_ref, o_ref, col_ref):
    """3x3 conv (stride 1, pad 1) + bias + ReLU for one tile of output rows.

    x_ref:   (Hp, Wp, Cin)   full zero-padded NHWC image of this batch element (Hp=H+2, Wp=W+2)
    w_ref:   (9*Cin, Cout)   im2col weight slab (tap-major rows), Cout zero-padded to C_PAD
    b_ref:   (1, Cout)       bias row (padded entries are zero)
    o_ref:   (TH*W, Cout)    lane-dense output rows for output rows [r*TH, (r+1)*TH)
    col_ref: (TH, W, 9*Cin)  VMEM im2col scratch, built once per grid step

    All 3x3 shifts are VMEM slices of the single padded input block; the whole reduction is one
    (TH*W, 9*Cin) @ (9*Cin, Cout) matmul (no chained per-tap accumulator).
    """
    th, w_out, _ = col_ref.shape
    cin = x_ref.shape[-1]
    cout = o_ref.shape[-1]

    r = pl.program_id(1)
    row0 = r * th
    if th % 8 == 0:
        row0 = pl.multiple_of(row0, 8)

    for ky in range(3):
        for kx in range(3):
            tap = ky * 3 + kx
            col_ref[:, :, tap * cin:(tap + 1) * cin] = (
                x_ref[pl.ds(row0 + ky, th), pl.ds(kx, w_out), :])

    col = col_ref[...].reshape(th * w_out, 9 * cin)
    acc = jnp.dot(col, w_ref[...], preferred_element_type=jnp.float32)   # (TH*W, Cout)
    o_ref[...] = jnp.maximum(acc + b_ref[...], 0.0).astype(o_ref.dtype)


def _gram_mse_kernel(f_ref, t_ref, o_ref, acc_ref, *, inv_norm, inv_cc):
    """Fused gram + MSE epilogue (grid (B, K)): o[b] = sum((G_b*inv_norm - T)^2) / C_true^2."""
    k = pl.program_id(1)

    @pl.when(k == 0)
    def _():
        acc_ref[...] = jnp.zeros_like(acc_ref)

    f = f_ref[...]                                              # (TK, C_PAD)
    acc_ref[...] += jax.lax.dot_general(
        f, f, (((0,), (0,)), ((), ())), preferred_element_type=jnp.float32)

    @pl.when(k == pl.num_programs(1) - 1)
    def _():
        d = acc_ref[...] * inv_norm - t_ref[...]                # padded region is exactly 0
        mse_b = jnp.sum(d * d) * inv_cc
        o_ref[...] = jnp.broadcast_to(mse_b, (1, 1))


def _gram_partial_kernel(f_ref, g_ref, acc_ref, *, inv_norm):
    """Contraction-split gram (grid (B, J, Kj)): each (b, j) accumulates its chunk of HW and
    writes a normalized partial gram; summing over j outside gives the full gram."""
    k = pl.program_id(2)

    @pl.when(k == 0)
    def _():
        acc_ref[...] = jnp.zeros_like(acc_ref)

    f = f_ref[...]                                              # (TK, C_PAD)
    acc_ref[...] += jax.lax.dot_general(
        f, f, (((0,), (0,)), ((), ())), preferred_element_type=jnp.float32)

    @pl.when(k == pl.num_programs(2) - 1)
    def _():
        g_ref[...] = acc_ref[...] * inv_norm


# ----------------------- wrappers -----------------------

def conv3x3_relu(x_nhwc, w_slab, b_row):
    """3x3 conv (stride 1, pad 1) + bias + ReLU. x: (B, H, W, Cin) NHWC -> (B, H, W, C_PAD)."""
    B, H, W, Cin = x_nhwc.shape
    Cin_k = w_slab.shape[0] // 9
    Cout = w_slab.shape[1]

    # Single zero-padded input (spatial halo + channel pad to the weight-slab K) -- no shifted copies.
    xp = jnp.pad(x_nhwc, ((0, 0), (1, 1), (1, 1), (0, max(0, Cin_k - Cin))))
    Cin = Cin_k
    Hp, Wp = H + 2, W + 2

    # Row split R: bounded GEMM rows per step and (when possible) >= 2 grid steps so both v7x
    # TensorCores stay busy even for B=1.
    R = 1
    for cand in range(1, H + 1):
        if H % cand != 0:
            continue
        rows = (H // cand) * W
        if rows <= _CFG["row_target"] and B * cand >= 2 and (rows % 8 == 0 or cand == 1):
            R = cand
            break
    TH = H // R

    x_block = Hp * Wp * Cin * 4
    w_bytes = 9 * Cin * Cout * 4
    out_block = TH * W * Cout * 4
    col_bytes = TH * W * 9 * Cin * 4

    out = pl.pallas_call(
        _conv3x3_bias_relu_kernel,
        out_shape=jax.ShapeDtypeStruct((B, H * W, Cout), jnp.float32),
        grid=(B, R),
        in_specs=[
            pl.BlockSpec((None, Hp, Wp, Cin), lambda b, r: (b, 0, 0, 0)),   # whole padded image
            pl.BlockSpec((9 * Cin, Cout), lambda b, r: (0, 0)),             # resident weight slab
            pl.BlockSpec((1, Cout), lambda b, r: (0, 0)),                   # resident bias
        ],
        out_specs=pl.BlockSpec((None, TH * W, Cout), lambda b, r: (b, r, 0)),
        scratch_shapes=[pltpu.VMEM((TH, W, 9 * Cin), jnp.float32)],
        compiler_params=pltpu.CompilerParams(
            dimension_semantics=("parallel", "parallel"),
            vmem_limit_bytes=_vmem_limit(x_block, w_bytes, out_block, col_bytes),
        ),
        cost_estimate=pl.CostEstimate(
            flops=int(2 * B * H * W * 9 * Cin * Cout),
            transcendentals=0,
            bytes_accessed=int(4 * (B * Hp * Wp * Cin + B * H * W * Cout + 9 * Cin * Cout)),
        ),
    )(xp, w_slab, b_row)
    return out.reshape(B, H, W, Cout)


def _gram_partials(feat_nhwc, c_true):
    """(B, H, W, C_PAD) -> (B, 2, C_PAD, C_PAD) normalized partial grams (sum over axis 1 = gram)."""
    B, H, W, Cp = feat_nhwc.shape
    HW = H * W
    f = feat_nhwc.reshape(B, HW, Cp)                            # pure reshape, no transpose

    J = 2                                                       # >= 2 parallel units for v7x's 2 TCs
    TK = min(_CFG["k_target"], _round_up(max(1, (HW + J - 1) // J), 8))
    HWp = _round_up(HW, TK * J)
    if HWp != HW:
        f = jnp.pad(f, ((0, 0), (0, HWp - HW), (0, 0)))         # zero rows don't change F^T F
    KJ = HWp // (TK * J)
    inv_norm = 1.0 / float(c_true * HW)

    in_block = TK * Cp * 4
    acc_bytes = Cp * Cp * 4
    return pl.pallas_call(
        functools.partial(_gram_partial_kernel, inv_norm=inv_norm),
        out_shape=jax.ShapeDtypeStruct((B, J, Cp, Cp), jnp.float32),
        grid=(B, J, KJ),
        in_specs=[pl.BlockSpec((None, TK, Cp), lambda b, j, k: (b, j * KJ + k, 0))],
        out_specs=pl.BlockSpec((None, None, Cp, Cp), lambda b, j, k: (b, j, 0, 0)),
        scratch_shapes=[pltpu.VMEM((Cp, Cp), jnp.float32)],
        compiler_params=pltpu.CompilerParams(
            dimension_semantics=("parallel", "parallel", "arbitrary"),
            vmem_limit_bytes=_vmem_limit(in_block, acc_bytes, acc_bytes),
        ),
        cost_estimate=pl.CostEstimate(
            flops=int(2 * B * HWp * Cp * Cp),
            transcendentals=0,
            bytes_accessed=int(4 * (B * HWp * Cp + B * J * Cp * Cp)),
        ),
    )(f)


def gram_matrix(feat_nhwc, c_true):
    """feat: (B, H, W, C_PAD) -> (B, C_PAD, C_PAD). True CxC block matches torch gram_matrix
    (normalized by 1/(c_true*H*W)); padded rows/cols are exactly zero."""
    return _gram_partials(feat_nhwc, c_true).sum(axis=1)


def _gram_mse_fused(feat_nhwc, target, c_true):
    """Fused gram + per-batch MSE vs. a (C_PAD, C_PAD) target; grid (B, K), returns (B, 1, 1)."""
    B, H, W, Cp = feat_nhwc.shape
    HW = H * W
    f = feat_nhwc.reshape(B, HW, Cp)
    TK = min(_CFG["k_target"], _round_up(HW, 8))
    HWp = _round_up(HW, TK)
    if HWp != HW:
        f = jnp.pad(f, ((0, 0), (0, HWp - HW), (0, 0)))
    inv_norm = 1.0 / float(c_true * HW)
    inv_cc = 1.0 / float(c_true * c_true)

    in_block = TK * Cp * 4
    acc_bytes = Cp * Cp * 4
    return pl.pallas_call(
        functools.partial(_gram_mse_kernel, inv_norm=inv_norm, inv_cc=inv_cc),
        out_shape=jax.ShapeDtypeStruct((B, 1, 1), jnp.float32),
        grid=(B, HWp // TK),
        in_specs=[
            pl.BlockSpec((None, TK, Cp), lambda b, k: (b, k, 0)),
            pl.BlockSpec((Cp, Cp), lambda b, k: (0, 0)),          # resident target
        ],
        out_specs=pl.BlockSpec((None, 1, 1), lambda b, k: (b, 0, 0)),
        scratch_shapes=[pltpu.VMEM((Cp, Cp), jnp.float32)],
        compiler_params=pltpu.CompilerParams(
            dimension_semantics=("parallel", "arbitrary"),
            vmem_limit_bytes=_vmem_limit(in_block, acc_bytes, acc_bytes, acc_bytes),
        ),
        cost_estimate=pl.CostEstimate(
            flops=int(2 * B * HWp * Cp * Cp + 3 * B * Cp * Cp),
            transcendentals=0,
            bytes_accessed=int(4 * (B * HWp * Cp + Cp * Cp + B)),
        ),
    )(f, target)


def gram_mse_vs_target(feat_nhwc, target, c_true):
    """gram-matrix + MSELoss('mean') vs. a (C_PAD, C_PAD) target broadcast over batch."""
    B = feat_nhwc.shape[0]
    if B % 2 == 0:
        # Even batch: batch axis alone keeps both v7x cores busy -> fused single-pass kernel.
        return jnp.mean(_gram_mse_fused(feat_nhwc, target, c_true))
    # Odd batch (incl. B=1): contraction-split partial grams keep both v7x cores busy with 1x
    # input reads; the MSE epilogue on the tiny (B, Cp, Cp) grams runs in XLA.
    g = gram_matrix(feat_nhwc, c_true)                          # (B, Cp, Cp)
    d = g - target[None]
    return jnp.mean(jnp.sum(d * d, axis=(1, 2))) / float(c_true * c_true)


# ----------------------- synthetic VGG-like feature extractor -----------------------
# TODO(synk): the real Vgg19FeatureExtractor uses pretrained torchvision weights and PIL image
# loading; a deterministic 2-block conv3x3+ReLU / maxpool / conv3x3+ReLU stand-in is used here.

def _to_weight_slab(w_oihw, c_pad):
    """(Cout, Cin, 3, 3) torch-layout weights -> (9*Cin, c_pad) im2col slab (tap-major rows)."""
    co, ci, kh, kw = w_oihw.shape
    w = jnp.transpose(w_oihw, (2, 3, 1, 0)).reshape(kh * kw * ci, co)
    return jnp.pad(w, ((0, 0), (0, c_pad - co)))


def init_params(key):
    k1, k2 = jax.random.split(key)
    c1, c2 = LAYER_CHANNELS
    w1 = 0.1 * jax.random.normal(k1, (c1, 3, 3, 3), jnp.float32)
    w2 = 0.1 * jax.random.normal(k2, (c2, c1, 3, 3), jnp.float32)
    # Zero-pad input channels: conv1 Cin 3 -> 8 (sublane-friendly K); conv2 consumes the
    # C_PAD-wide conv1 output.  Padded weights AND biases must stay exactly zero so padded
    # channels never leak into the grams (inv_norm / inv_cc use the true channel counts).
    w1 = jnp.pad(w1, ((0, 0), (0, 8 - 3), (0, 0), (0, 0)))
    w2 = jnp.pad(w2, ((0, 0), (0, C_PAD - c1), (0, 0), (0, 0)))
    return {
        "w1": _to_weight_slab(w1, C_PAD),                       # (72, 128)
        "b1": jnp.zeros((1, C_PAD), jnp.float32),
        "w2": _to_weight_slab(w2, C_PAD),                       # (1152, 128)
        "b2": jnp.zeros((1, C_PAD), jnp.float32),
    }


def max_pool_2x2(x_nhwc):
    # TODO(synk): fuse into the conv1 epilogue (second, pooled output) to save one HBM pass at
    # real VGG resolutions; negligible at the demo sizes.
    B, H, W, C = x_nhwc.shape
    return x_nhwc.reshape(B, H // 2, 2, W // 2, 2, C).max(axis=(2, 4))


def vgg_features(x_nchw, params):
    x = jnp.transpose(x_nchw, (0, 2, 3, 1))                     # one-time NHWC conversion (3 ch)
    f1 = conv3x3_relu(x, params["w1"], params["b1"])            # (B, H, W, 128), true C = 8
    f2 = conv3x3_relu(max_pool_2x2(f1), params["w2"], params["b2"])  # (B, H/2, W/2, 128), true C = 16
    return [f1, f2]


def generate_targets(style_image_nchw, params):
    """Mirrors PerceptualStyleLoss.generate_targets + get_individual_syle_weight (one-time setup)."""
    feats = vgg_features(style_image_nchw, params)
    grams = [gram_matrix(f, c) for f, c in zip(feats, LAYER_CHANNELS)]
    norms = [jnp.sqrt(jnp.sum(g * g)) for g in grams]           # Frobenius norms (setup glue)
    w = 3.0 / (sum(norms) / len(norms))
    return [g[0] * w for g in grams]                            # each (C_PAD, C_PAD)


def perceptual_style_loss(y_nchw, params, targets, style_weight=1.0):
    """Forward pass of PerceptualStyleLoss (gram + MSE fused per layer)."""
    feats = vgg_features(y_nchw, params)
    losses = [gram_mse_vs_target(f, t, c)
              for f, t, c in zip(feats, targets, LAYER_CHANNELS)]
    return style_weight * jnp.sum(jnp.stack(losses))


# ----------------------- main -----------------------

if __name__ == "__main__":
    key = jax.random.PRNGKey(0)
    kp, ks, ky = jax.random.split(key, 3)

    params = init_params(kp)
    style_image = jax.random.uniform(ks, (1, 3, 16, 16), jnp.float32)   # NCHW "style image"
    targets = generate_targets(style_image, params)                      # exercises B=1 paths

    y = jax.random.uniform(ky, (2, 3, 16, 16), jnp.float32)              # NCHW input batch
    loss = jax.jit(perceptual_style_loss)(y, params, targets)            # even-B fused path
    jax.block_until_ready(loss)

    y_odd = jax.random.uniform(ky, (1, 3, 16, 16), jnp.float32)
    loss_odd = jax.jit(perceptual_style_loss)(y_odd, params, targets)    # odd-B split path
    jax.block_until_ready(loss_odd)

    print("KERNEL_OK")
</pallas_src>

<mosaic_0001>
module attributes {stable_mosaic.version = 11 : i64} {
  func.func @_conv3x3_bias_relu_kernel(%arg0: i32, %arg1: i32, %arg2: memref<1x18x18x8xf32, #tpu.memory_space<vmem>>, %arg3: memref<72x128xf32, #tpu.memory_space<vmem>>, %arg4: memref<1x128xf32, #tpu.memory_space<vmem>>, %arg5: memref<1x128x128xf32, #tpu.memory_space<vmem>>, %arg6: memref<8x16x72xf32, #tpu.memory_space<vmem>>) attributes {dimension_semantics = [#tpu.dimension_semantics<parallel>, #tpu.dimension_semantics<parallel>], iteration_bounds = array<i64: 1, 2>, scalar_prefetch = 0 : i64, scratch_operands = 1 : i64, tpu.core_type = #tpu.core_type<tc>, window_params = [{transform_indices = @transform_0, window_bounds = array<i64: 1, 18, 18, 8>}, {pipeline_mode = #tpu.pipeline_mode<synchronous>, transform_indices = @transform_1, window_bounds = array<i64: 72, 128>}, {pipeline_mode = #tpu.pipeline_mode<synchronous>, transform_indices = @transform_2, window_bounds = array<i64: 1, 128>}, {transform_indices = @transform_3, window_bounds = array<i64: 1, 128, 128>}]} {
    %c8_i32 = arith.constant 8 : i32
    %0 = arith.muli %arg1, %c8_i32 : i32
    %1 = tpu.assume_multiple %0, 8 : i32
    %c0_i32 = arith.constant 0 : i32
    %2 = arith.addi %1, %c0_i32 : i32
    %c0 = arith.constant 0 : index
    %3 = arith.index_cast %2 : i32 to index
    %c0_0 = arith.constant 0 : index
    %c0_1 = arith.constant 0 : index
    %4 = vector.load %arg2[%c0, %3, %c0_0, %c0_1] : memref<1x18x18x8xf32, #tpu.memory_space<vmem>>, vector<1x8x16x8xf32>
    %5 = vector.shape_cast %4 : vector<1x8x16x8xf32> to vector<8x16x8xf32>
    %c0_2 = arith.constant 0 : index
    %c0_3 = arith.constant 0 : index
    %c0_4 = arith.constant 0 : index
    %6 = vector.load %arg6[%c0_2, %c0_3, %c0_4] : memref<8x16x72xf32, #tpu.memory_space<vmem>>, vector<8x16x8xf32>
    tpu.vector_store %arg6[%c0_2, %c0_3, %c0_4], %5 {strides = array<i32>} : memref<8x16x72xf32, #tpu.memory_space<vmem>>, vector<8x16x8xf32>,
    %c0_i32_5 = arith.constant 0 : i32
    %7 = arith.addi %1, %c0_i32_5 : i32
    %c0_6 = arith.constant 0 : index
    %8 = arith.index_cast %7 : i32 to index
    %c1 = arith.constant 1 : index
    %c0_7 = arith.constant 0 : index
    %9 = vector.load %arg2[%c0_6, %8, %c1, %c0_7] : memref<1x18x18x8xf32, #tpu.memory_space<vmem>>, vector<1x8x16x8xf32>
    %10 = vector.shape_cast %9 : vector<1x8x16x8xf32> to vector<8x16x8xf32>
    %c0_8 = arith.constant 0 : index
    %c0_9 = arith.constant 0 : index
    %c8 = arith.constant 8 : index
    %11 = vector.load %arg6[%c0_8, %c0_9, %c8] : memref<8x16x72xf32, #tpu.memory_space<vmem>>, vector<8x16x8xf32>
    tpu.vector_store %arg6[%c0_8, %c0_9, %c8], %10 {strides = array<i32>} : memref<8x16x72xf32, #tpu.memory_space<vmem>>, vector<8x16x8xf32>,
    %c0_i32_10 = arith.constant 0 : i32
    %12 = arith.addi %1, %c0_i32_10 : i32
    %c0_11 = arith.constant 0 : index
    %13 = arith.index_cast %12 : i32 to index
    %c2 = arith.constant 2 : index
    %c0_12 = arith.constant 0 : index
    %14 = vector.load %arg2[%c0_11, %13, %c2, %c0_12] : memref<1x18x18x8xf32, #tpu.memory_space<vmem>>, vector<1x8x16x8xf32>
    %15 = vector.shape_cast %14 : vector<1x8x16x8xf32> to vector<8x16x8xf32>
    %c0_13 = arith.constant 0 : index
    %c0_14 = arith.constant 0 : index
    %c16 = arith.constant 16 : index
    %16 = vector.load %arg6[%c0_13, %c0_14, %c16] : memref<8x16x72xf32, #tpu.memory_space<vmem>>, vector<8x16x8xf32>
    tpu.vector_store %arg6[%c0_13, %c0_14, %c16], %15 {strides = array<i32>} : memref<8x16x72xf32, #tpu.memory_space<vmem>>, vector<8x16x8xf32>,
    %c1_i32 = arith.constant 1 : i32
    %17 = arith.addi %1, %c1_i32 : i32
    %c0_15 = arith.constant 0 : index
    %18 = arith.index_cast %17 : i32 to index
    %c0_16 = arith.constant 0 : index
    %c0_17 = arith.constant 0 : index
    %19 = vector.load %arg2[%c0_15, %18, %c0_16, %c0_17] : memref<1x18x18x8xf32, #tpu.memory_space<vmem>>, vector<1x8x16x8xf32>
    %20 = vector.shape_cast %19 : vector<1x8x16x8xf32> to vector<8x16x8xf32>
    %c0_18 = arith.constant 0 : index
    %c0_19 = arith.constant 0 : index
    %c24 = arith.constant 24 : index
    %21 = vector.load %arg6[%c0_18, %c0_19, %c24] : memref<8x16x72xf32, #tpu.memory_space<vmem>>, vector<8x16x8xf32>
    tpu.vector_store %arg6[%c0_18, %c0_19, %c24], %20 {strides = array<i32>} : memref<8x16x72xf32, #tpu.memory_space<vmem>>, vector<8x16x8xf32>,
    %c1_i32_20 = arith.constant 1 : i32
    %22 = arith.addi %1, %c1_i32_20 : i32
    %c0_21 = arith.constant 0 : index
    %23 = arith.index_cast %22 : i32 to index
    %c1_22 = arith.constant 1 : index
    %c0_23 = arith.constant 0 : index
    %24 = vector.load %arg2[%c0_21, %23, %c1_22, %c0_23] : memref<1x18x18x8xf32, #tpu.memory_space<vmem>>, vector<1x8x16x8xf32>
    %25 = vector.shape_cast %24 : vector<1x8x16x8xf32> to vector<8x16x8xf32>
    %c0_24 = arith.constant 0 : index
    %c0_25 = arith.constant 0 : index
    %c32 = arith.constant 32 : index
    %26 = vector.load %arg6[%c0_24, %c0_25, %c32] : memref<8x16x72xf32, #tpu.memory_space<vmem>>, vector<8x16x8xf32>
    tpu.vector_store %arg6[%c0_24, %c0_25, %c32], %25 {strides = array<i32>} : memref<8x16x72xf32, #tpu.memory_space<vmem>>, vector<8x16x8xf32>,
    %c1_i32_26 = arith.constant 1 : i32
    %27 = arith.addi %1, %c1_i32_26 : i32
    %c0_27 = arith.constant 0 : index
    %28 = arith.index_cast %27 : i32 to index
    %c2_28 = arith.constant 2 : index
    %c0_29 = arith.constant 0 : index
    %29 = vector.load %arg2[%c0_27, %28, %c2_28, %c0_29] : memref<1x18x18x8xf32, #tpu.memory_space<vmem>>, vector<1x8x16x8xf32>
    %30 = vector.shape_cast %29 : vector<1x8x16x8xf32> to vector<8x16x8xf32>
    %c0_30 = arith.constant 0 : index
    %c0_31 = arith.constant 0 : index
    %c40 = arith.constant 40 : index
    %31 = vector.load %arg6[%c0_30, %c0_31, %c40] : memref<8x16x72xf32, #tpu.memory_space<vmem>>, vector<8x16x8xf32>
    tpu.vector_store %arg6[%c0_30, %c0_31, %c40], %30 {strides = array<i32>} : memref<8x16x72xf32, #tpu.memory_space<vmem>>, vector<8x16x8xf32>,
    %c2_i32 = arith.constant 2 : i32
    %32 = arith.addi %1, %c2_i32 : i32
    %c0_32 = arith.constant 0 : index
    %33 = arith.index_cast %32 : i32 to index
    %c0_33 = arith.constant 0 : index
    %c0_34 = arith.constant 0 : index
    %34 = vector.load %arg2[%c0_32, %33, %c0_33, %c0_34] : memref<1x18x18x8xf32, #tpu.memory_space<vmem>>, vector<1x8x16x8xf32>
    %35 = vector.shape_cast %34 : vector<1x8x16x8xf32> to vector<8x16x8xf32>
    %c0_35 = arith.constant 0 : index
    %c0_36 = arith.constant 0 : index
    %c48 = arith.constant 48 : index
    %36 = vector.load %arg6[%c0_35, %c0_36, %c48] : memref<8x16x72xf32, #tpu.memory_space<vmem>>, vector<8x16x8xf32>
    tpu.vector_store %arg6[%c0_35, %c0_36, %c48], %35 {strides = array<i32>} : memref<8x16x72xf32, #tpu.memory_space<vmem>>, vector<8x16x8xf32>,
    %c2_i32_37 = arith.constant 2 : i32
    %37 = arith.addi %1, %c2_i32_37 : i32
    %c0_38 = arith.constant 0 : index
    %38 = arith.index_cast %37 : i32 to index
    %c1_39 = arith.constant 1 : index
    %c0_40 = arith.constant 0 : index
    %39 = vector.load %arg2[%c0_38, %38, %c1_39, %c0_40] : memref<1x18x18x8xf32, #tpu.memory_space<vmem>>, vector<1x8x16x8xf32>
    %40 = vector.shape_cast %39 : vector<1x8x16x8xf32> to vector<8x16x8xf32>
    %c0_41 = arith.constant 0 : index
    %c0_42 = arith.constant 0 : index
    %c56 = arith.constant 56 : index
    %41 = vector.load %arg6[%c0_41, %c0_42, %c56] : memref<8x16x72xf32, #tpu.memory_space<vmem>>, vector<8x16x8xf32>
    tpu.vector_store %arg6[%c0_41, %c0_42, %c56], %40 {strides = array<i32>} : memref<8x16x72xf32, #tpu.memory_space<vmem>>, vector<8x16x8xf32>,
    %c2_i32_43 = arith.constant 2 : i32
    %42 = arith.addi %1, %c2_i32_43 : i32
    %c0_44 = arith.constant 0 : index
    %43 = arith.index_cast %42 : i32 to index
    %c2_45 = arith.constant 2 : index
    %c0_46 = arith.constant 0 : index
    %44 = vector.load %arg2[%c0_44, %43, %c2_45, %c0_46] : memref<1x18x18x8xf32, #tpu.memory_space<vmem>>, vector<1x8x16x8xf32>
    %45 = vector.shape_cast %44 : vector<1x8x16x8xf32> to vector<8x16x8xf32>
    %c0_47 = arith.constant 0 : index
    %c0_48 = arith.constant 0 : index
    %c64 = arith.constant 64 : index
    %46 = vector.load %arg6[%c0_47, %c0_48, %c64] : memref<8x16x72xf32, #tpu.memory_space<vmem>>, vector<8x16x8xf32>
    tpu.vector_store %arg6[%c0_47, %c0_48, %c64], %45 {strides = array<i32>} : memref<8x16x72xf32, #tpu.memory_space<vmem>>, vector<8x16x8xf32>,
    %c0_49 = arith.constant 0 : index
    %c0_50 = arith.constant 0 : index
    %c0_51 = arith.constant 0 : index
    %47 = vector.load %arg6[%c0_49, %c0_50, %c0_51] : memref<8x16x72xf32, #tpu.memory_space<vmem>>, vector<8x16x72xf32>
    %48 = vector.shape_cast %47 : vector<8x16x72xf32> to vector<128x72xf32>
    %c0_52 = arith.constant 0 : index
    %c0_53 = arith.constant 0 : index
    %49 = vector.load %arg3[%c0_52, %c0_53] : memref<72x128xf32, #tpu.memory_space<vmem>>, vector<72x128xf32>
    %cst = arith.constant dense<0.000000e+00> : vector<128x128xf32>
    %50 = tpu.matmul %48, %49, %cst {dimension_numbers = #tpu.dot_dimension_numbers<[1], [0], [0], [1], [0, 0, 1, 1], [], []>} : vector<128x72xf32>, vector<72x128xf32>, vector<128x128xf32> -> vector<128x128xf32>
    %c0_54 = arith.constant 0 : index
    %c0_55 = arith.constant 0 : index
    %51 = vector.load %arg4[%c0_54, %c0_55] : memref<1x128xf32, #tpu.memory_space<vmem>>, vector<1x128xf32>
    %52 = vector.broadcast %51 : vector<1x128xf32> to vector<128x128xf32>
    %53 = arith.addf %50, %52 : vector<128x128xf32>
    %cst_56 = arith.constant 0.000000e+00 : f32
    %54 = vector.broadcast %cst_56 : f32 to vector<128x128xf32>
    %55 = arith.maximumf %53, %54 : vector<128x128xf32>
    %c0_57 = arith.constant 0 : index
    %c0_58 = arith.constant 0 : index
    %c0_59 = arith.constant 0 : index
    %56 = vector.load %arg5[%c0_57, %c0_58, %c0_59] : memref<1x128x128xf32, #tpu.memory_space<vmem>>, vector<1x128x128xf32>
    %57 = vector.shape_cast %56 : vector<1x128x128xf32> to vector<128x128xf32>
    %58 = vector.shape_cast %55 : vector<128x128xf32> to vector<1x128x128xf32>
    tpu.vector_store %arg5[%c0_57, %c0_58, %c0_59], %58 {strides = array<i32>} : memref<1x128x128xf32, #tpu.memory_space<vmem>>, vector<1x128x128xf32>,
    return
  }
  func.func @transform_0(%arg0: i32, %arg1: i32) -> (i32, i32, i32, i32) {
    %c0_i32 = arith.constant 0 : i32
    %c0_i32_0 = arith.constant 0 : i32
    %c0_i32_1 = arith.constant 0 : i32
    %c0_i32_2 = arith.constant 0 : i32
    return %arg0, %c0_i32, %c0_i32_0, %c0_i32_1 : i32, i32, i32, i32
  }
  func.func @transform_1(%arg0: i32, %arg1: i32) -> (i32, i32) {
    %c0_i32 = arith.constant 0 : i32
    %c0_i32_0 = arith.constant 0 : i32
    %c0_i32_1 = arith.constant 0 : i32
    return %c0_i32, %c0_i32_0 : i32, i32
  }
  func.func @transform_2(%arg0: i32, %arg1: i32) -> (i32, i32) {
    %c0_i32 = arith.constant 0 : i32
    %c0_i32_0 = arith.constant 0 : i32
    %c0_i32_1 = arith.constant 0 : i32
    return %c0_i32, %c0_i32_0 : i32, i32
  }
  func.func @transform_3(%arg0: i32, %arg1: i32) -> (i32, i32, i32) {
    %c0_i32 = arith.constant 0 : i32
    %c0_i32_0 = arith.constant 0 : i32
    return %arg0, %arg1, %c0_i32 : i32, i32, i32
  }
}

</mosaic_0001>

<bundles_post_ra>
// kernel: tpu_custom_call.1
= control target key start
LH: loop header
LB: loop body
LE: loop exit
PB: predicated region body
PF: predicated region fallthrough
CT: control target
= control target key end

     0   :  { %8 = vsyncpa [#allocation4], 0  ;;  %s2378_s0 = inlined_call_operand.vmem [shape: f32[1,18,18,8], index: 0, kind: input, shape index: {}]   ;;  %s2379_s1 = inlined_call_operand.vmem [shape: f32[72,128], index: 1, kind: input, shape index: {}]   ;;  %s2380_s2 = inlined_call_operand.vmem [shape: f32[1,128], index: 2, kind: input, shape index: {}]   ;;  %s2381_s3 = inlined_call_operand.hbm [shape: f32[1,256,128], index: 3, kind: output, shape index: {}]  }
   0x1   :  { %10 = vsyncpa [#allocation4 + $0x1], 0  ;;  %s1760_s12 = smov 0   ;;  %s1762_s13 = smov 0  }
   0x2   :  { %s1764_s14 = smov 0   ;;  %s1766_s15 = smov 0  }
   0x3   :  { %s1768_s16 = smov 0   ;;  %s1770_s17 = smov 0  }
   0x4 LB: > { %s1362_s18 = sadd.s32 4294967295, %s1728_s17   ;;  %s1363_s19 = sadd.s32 4294967294, %s1728_s17   ;;  %s1728_s17 = sphi %s1770_s17, %s16_s17   ;;  %s1724_s16 = sphi %s1768_s16, %s2388_s16   ;;  %s1720_s15 = sphi %s1766_s15, %s2387_s15   ;;  %s1716_s14 = sphi %s1764_s14, %s2386_s14   ;;  %s1712_s13 = sphi %s1762_s13, %s2385_s13   ;;  %s1708_s12 = sphi %s1760_s12, %s2384_s12  }
   0x5   : > { %s25_s20 = sadd.s32 1, %s1724_s16  ;;  %s105_s21 = sadd.s32 1, %s1716_s14 }
   0x6   : > { %p26_p0 = scmp.ge.s32.totalorder %s25_s20, 2  ;;  %p115_p1 = scmp.ne.s32.totalorder %s1716_s14, %s1712_s13 }
   0x7   : > { %p116_p2 = scmp.eq.s32.totalorder %s1362_s18, 1  ;;  %p121_p3 = scmp.ne.s32.totalorder %s1712_s13, %s1708_s12 }
   0x8   : > { %s2390_s20 = smov (%p26_p0, %s25_s20), 0  ;;  %p122_p5 = scmp.eq.s32.totalorder %s1363_s19, 1 }
   0x9   : > { %p1800_p4 = por %p116_p2, %p115_p1  ;;  %s101_s23 = ssub.s32 %s1724_s16, %s2390_s20 }
   0xa   : > { %p1366_p6 = scmp.ge.s32.totalorder %s1728_s17, 1  ;;  %p103_p7 = scmp.eq.s32.totalorder %s101_s23, 0 }
   0xb   : > { %p1807_p8 = por %p122_p5, %p121_p3  ;;  %p154_p9 = scmp.lt.s32.totalorder %s1728_s17, 3 }
   0xc   : > { %s1813_s25 = scalar_select %p103_p7, %s1716_s14, %s105_s21  }
   0xd   : > { %p155_p10 = pnand %p1366_p6, %p154_p9 }
   0xe   : > { %s1369_s26 = smul.u32 (!%p155_p10), 192, %s1720_s15  ;;  %s1730_s30 = smov (!%p155_p10), 8   ;;  %vm203_vm0 = vcmask (!%p155_p10), 64512   ;;  %v1018_v34 = vld [vmem:[%s2379_s1] sm:$0xff] (!%p155_p10)  ;;  %v1019_v35 = vld [vmem:[%s2379_s1 + $0x8] sm:$0xff] (!%p155_p10)  ;;  %v1020_v39 = vld [vmem:[%s2379_s1 + $0x10] sm:$0xff] (!%p155_p10) }
   0xf   : > { %158 = sbr.rel (%p155_p10) target bundleno = 626 (0x272), region = 32  ;;  %s1731_s4 = smov (!%p155_p10), 16   ;;  %v1560_v36 = vpack.c.bf16 (!%p155_p10), %v1019_v35, %v1018_v34  ;;  %v1021_v40 = vld [vmem:[%s2379_s1 + $0x18] sm:$0xff] (!%p155_p10)  ;;  %v1022_v44 = vld [vmem:[%s2379_s1 + $0x20] sm:$0xff] (!%p155_p10)  ;;  %v1023_v45 = vld [vmem:[%s2379_s1 + $0x28] sm:$0xff] (!%p155_p10)  ;;  %vm300_vm1 = vcmask (!%p155_p10), 130112  }
  0x10   : > { %s1819_s29 = scalar_lea.vmem (!%p155_p10), %s2378_s0, %s1369_s26  ;;  %s1732_s5 = smov (!%p155_p10), 24   ;;  %v1564_v41 = vpack.c.bf16 (!%p155_p10), %v1021_v40, %v1020_v39  ;;  %v1568_v46 = vpack.c.bf16 (!%p155_p10), %v1023_v45, %v1022_v44  ;;  %v1024_v47 = vld [vmem:[%s2379_s1 + $0x30] sm:$0xff] (!%p155_p10)  ;;  %v1025_v48 = vld [vmem:[%s2379_s1 + $0x38] sm:$0xff] (!%p155_p10)  ;;  %v1026_v50 = vld [vmem:[%s2379_s1 + $0x40] sm:$0xff] (!%p155_p10)  ;;  %vm397_vm2 = vcmask (!%p155_p10), 195712   ;;  %vm497_vm3 = vcmask (!%p155_p10), 261312  }
  0x11   : > { %v221_v0 = vld [vmem:[%s1819_s29 + $0x9] sm:$0xff] (!%p155_p10)  ;;  %v220_v1 = vld [vmem:[%s1819_s29 + $0x1] sm:$0xff] (!%p155_p10)  ;;  %v1832_v4 = vld [vmem:[%s1819_s29 + $0x78] sm:$0xff] (!%p155_p10)  ;;  %s1733_s6 = smov (!%p155_p10), 32   ;;  %s1734_s7 = smov (!%p155_p10), 40   ;;  %1561 = vmatprep.subr.bf16.mxu0 (!%p155_p10), %v1560_v36  ;;  %1576 = vmatprep.subr.bf16.mxu1 (!%p155_p10), %v1560_v36  ;;  %v1572_v49 = vpack.c.bf16 (!%p155_p10), %v1025_v48, %v1024_v47  ;;  %vm594_vm4 = vcmask (!%p155_p10), 326912  }
  0x12   : > { %254 = vrot.lane.b32.xlu1 (!%p155_p10), %v221_v0, %s1730_s30  ;;  %252 = vrot.lane.b32.xlu0 (!%p155_p10), %v220_v1, %s1730_s30  ;;  %v1826_v2 = vld [vmem:[%s1819_s29 + $0x69] sm:$0xff] (!%p155_p10)  ;;  %v1829_v3 = vld [vmem:[%s1819_s29 + $0x61] sm:$0xff] (!%p155_p10)  ;;  %214 = vst.msk [vmem:[#allocation2 + $0x50] sm:$0xff] (!%p155_p10), %vm203_vm0, %v1832_v4  ;;  %s1735_s8 = smov (!%p155_p10), 48   ;;  %s1736_s9 = smov (!%p155_p10), 56   ;;  %vm691_vm5 = vcmask (!%p155_p10), 392512  }
  0x13   : > { %v1372_v5 = vld [vmem:[%s1819_s29 + $0x18] sm:$0xff] (!%p155_p10)  ;;  %v1836_v6 = vld [vmem:[%s1819_s29 + $0x80] sm:$0xff] (!%p155_p10)  ;;  %v1854_v10 = vld [vmem:[%s1819_s29 + $0x90] sm:$0xff] (!%p155_p10)  ;;  %1563 = vmatpush3.bf16.msra.mxu0 (!%p155_p10), %v1560_v36  ;;  %1581 = vmatpush3.bf16.msra.mxu1 (!%p155_p10), %v1560_v36  ;;  %s1737_s19 = smov (!%p155_p10), 64   ;;  %vm791_vm6 = vcmask (!%p155_p10), 458112   ;;  %vm888_vm7 = vcmask (!%p155_p10), 523712  }
  0x14   : > { %v1373_v7 = vld [vmem:[%s1819_s29 + $0x20] sm:$0xff] (!%p155_p10)  ;;  %206 = vst.msk [vmem:[#allocation2 + $0x10] sm:$0xff] (!%p155_p10), %vm203_vm0, %v1372_v5  ;;  %215 = vst.msk [vmem:[#allocation2 + $0x58] sm:$0xff] (!%p155_p10), %vm203_vm0, %v1836_v6  ;;  %v1857_v11 = vld [vmem:[%s1819_s29 + $0x30] sm:$0xff] (!%p155_p10)  ;;  %1565 = vmatprep.subr.bf16.mxu0 (!%p155_p10), %v1564_v41  ;;  %1577 = vmatprep.subr.bf16.mxu1 (!%p155_p10), %v1564_v41  ;;  %vm985_vm8 = vcmask (!%p155_p10), 589312   ;;  %vm1034_vm9 = vcmask (!%p155_p10), 588800  }
  0x15   : > { %207 = vst.msk [vmem:[#allocation2 + $0x18] sm:$0xff] (!%p155_p10), %vm203_vm0, %v1373_v7  ;;  %v1850_v8 = vld [vmem:[%s1819_s29 + $0x62] sm:$0xff] (!%p155_p10)  ;;  %v1860_v12 = vld [vmem:[%s1819_s29 + $0x98] sm:$0xff] (!%p155_p10)  ;;  %216 = vst.msk [vmem:[#allocation2 + $0x60] sm:$0xff] (!%p155_p10), %vm203_vm0, %v1854_v10  ;;  %s1738_s23 = smov (!%p155_p10), [#allocation3]  }
  0x16   : > { %270 = vrot.lane.b32.xlu1 %v1826_v2, %s1730_s30  ;;  %268 = vrot.lane.b32.xlu0 %v1829_v3, %s1730_s30  ;;  %v317_v9 = vld [vmem:[%s1819_s29 + $0x2] sm:$0xff]  ;;  %v1863_v13 = vld [vmem:[%s1819_s29 + $0x38] sm:$0xff]  ;;  %208 = vst.msk [vmem:[#allocation2 + $0x20] sm:$0xff] %vm203_vm0, %v1857_v11  ;;  %217 = vst.msk [vmem:[#allocation2 + $0x68] sm:$0xff] %vm203_vm0, %v1860_v12  ;;  %s1654_s26 = sshll.u32 %s1738_s23, 4  ;;  %s1655_s26 = int_to_ptr.vmem [resolvable:$false] %s1654_s26 }
  0x17   : > { %209 = vst.msk [vmem:[#allocation2 + $0x28] sm:$0xff] %vm203_vm0, %v1863_v13  ;;  %v1877_v14 = vld [vmem:[%s1819_s29 + $0x6a] sm:$0xff]  ;;  %v187_v17 = vld [vmem:[%s1819_s29] sm:$0xff]  ;;  %v1462_v42 = vld [vmem:[%s1819_s29 + $0x92] sm:$0xff]  ;;  %1567 = vmatpush3.bf16.msra.mxu0 %v1564_v41  ;;  %1582 = vmatpush3.bf16.msra.mxu1 %v1564_v41  ;;  %s1656_s27 = scalar_lea.vmem %s1655_s26, 4096 }
  0x18   : > { %v318_v15 = vld [vmem:[%s1819_s29 + $0xa] sm:$0xff]  ;;  %204 = vst.msk [vmem:[#allocation2] sm:$0xff] %vm203_vm0, %v187_v17  ;;  %v1897_v21 = vld [vmem:[%s1819_s29 + $0x60] sm:$0xff]  ;;  %v1454_v43 = vld [vmem:[%s1819_s29 + $0x32] sm:$0xff]  ;;  %1569 = vmatprep.subr.bf16.mxu0 %v1568_v46  ;;  %1578 = vmatprep.subr.bf16.mxu1 %v1568_v46 }
  0x19   : > { %v188_v16 = vld [vmem:[%s1819_s29 + $0x8] sm:$0xff]  ;;  %212 = vst.msk [vmem:[#allocation2 + $0x40] sm:$0xff] %vm203_vm0, %v1897_v21  ;;  %v1908_v22 = vld [vmem:[%s1819_s29 + $0xb0] sm:$0xff]  ;;  %v1924_v24 = vld [vmem:[%s1819_s29 + $0x79] sm:$0xff] }
  0x1a   : > { %365 = vrot.lane.b32.xlu1 %v1850_v8, %s1731_s4  ;;  %349 = vrot.lane.b32.xlu0 %v317_v9, %s1731_s4  ;;  %205 = vst.msk [vmem:[#allocation2 + $0x8] sm:$0xff] %vm203_vm0, %v188_v16  ;;  %v1884_v18 = vld [vmem:[%s1819_s29 + $0xa8] sm:$0xff]  ;;  %v1911_v23 = vld [vmem:[%s1819_s29 + $0x50] sm:$0xff]  ;;  %219 = vst.msk [vmem:[#allocation2 + $0x78] sm:$0xff] %vm203_vm0, %v1908_v22 }
  0x1b   : > { %v1887_v19 = vld [vmem:[%s1819_s29 + $0x48] sm:$0xff]  ;;  %218 = vst.msk [vmem:[#allocation2 + $0x70] sm:$0xff] %vm203_vm0, %v1884_v18  ;;  %211 = vst.msk [vmem:[#allocation2 + $0x38] sm:$0xff] %vm203_vm0, %v1911_v23  ;;  %v1388_v25 = vld [vmem:[%s1819_s29 + $0x19] sm:$0xff]  ;;  %1571 = vmatpush3.bf16.msra.mxu0 %v1568_v46  ;;  %1583 = vmatpush3.bf16.msra.mxu1 %v1568_v46 }
  0x1c   : > { %v1894_v20 = vld [vmem:[%s1819_s29 + $0x68] sm:$0xff]  ;;  %210 = vst.msk [vmem:[#allocation2 + $0x30] sm:$0xff] %vm203_vm0, %v1887_v19  ;;  %v1941_v28 = vld [vmem:[%s1819_s29 + $0x7a] sm:$0xff]  ;;  %v1446_v32 = vld [vmem:[%s1819_s29 + $0x91] sm:$0xff]  ;;  %1573 = vmatprep.subr.bf16.mxu0 %v1572_v49  ;;  %1579 = vmatprep.subr.bf16.mxu1 %v1572_v49 }
  0x1d   : > { %213 = vst.msk [vmem:[#allocation2 + $0x48] sm:$0xff] %vm203_vm0, %v1894_v20  ;;  %v1934_v26 = vld [vmem:[%s1819_s29 + $0x81] sm:$0xff]  ;;  %v1438_v33 = vld [vmem:[%s1819_s29 + $0x31] sm:$0xff]  ;;  %v1447_v37 = vld [vmem:[%s1819_s29 + $0x99] sm:$0xff] }
  0x1e   : > { %367 = vrot.lane.b32.xlu1 %v1877_v14, %s1731_s4  ;;  %351 = vrot.lane.b32.xlu0 %v318_v15, %s1731_s4  ;;  %v1389_v27 = vld [vmem:[%s1819_s29 + $0x21] sm:$0xff]  ;;  %v1439_v38 = vld [vmem:[%s1819_s29 + $0x39] sm:$0xff] }
  0x1f   : > { %v1404_v29 = vld [vmem:[%s1819_s29 + $0x1a] sm:$0xff]  ;;  %v1954_v30 = vld [vmem:[%s1819_s29 + $0x82] sm:$0xff]  ;;  %1575 = vmatpush3.bf16.msra.mxu0 %v1572_v49  ;;  %1584 = vmatpush3.bf16.msra.mxu1 %v1572_v49  ;;  %v1464_v15 = vld [vmem:[%s1819_s29 + $0xaa] sm:$0xff] }
  0x20   : > { %v1405_v31 = vld [vmem:[%s1819_s29 + $0x22] sm:$0xff]  ;;  %1534 = vmatprep.subr.mxu0 %v1026_v50  ;;  %1580 = vmatprep.subr.mxu1 %v1026_v50  ;;  %v1463_v51 = vld [vmem:[%s1819_s29 + $0x9a] sm:$0xff]  ;;  %v1456_v16 = vld [vmem:[%s1819_s29 + $0x4a] sm:$0xff] }
  0x21   : > { %v1455_v52 = vld [vmem:[%s1819_s29 + $0x3a] sm:$0xff]  ;;  %v1448_v61 = vld [vmem:[%s1819_s29 + $0xa9] sm:$0xff] }
  0x22   : > { %465 = vrot.lane.b32.xlu1 %v1832_v4, %s1732_s5  ;;  %449 = vrot.lane.b32.xlu0 %v1372_v5, %s1732_s5  ;;  %v1440_v62 = vld [vmem:[%s1819_s29 + $0x49] sm:$0xff]  ;;  %v1434_v41 = vld [vmem:[%s1819_s29 + $0xc0] sm:$0xff] }
  0x23   : > { %1535 = vmatpush3.msra.mxu0 %v1026_v50  ;;  %1585 = vmatpush3.msra.mxu1 %v1026_v50  ;;  %v1435_v48 = vld [vmem:[%s1819_s29 + $0xc8] sm:$0xff] }
  0x26   : > { %467 = vrot.lane.b32.xlu1 %v1836_v6, %s1732_s5  ;;  %451 = vrot.lane.b32.xlu0 %v1373_v7, %s1732_s5 }
  0x2a   : > { %562 = vrot.lane.b32.xlu1 %v1924_v24, %s1733_s6  ;;  %546 = vrot.lane.b32.xlu0 %v1388_v25, %s1733_s6 }
  0x2e   : > { %272 = vrot.lane.b32.xlu1 %v1924_v24, %s1730_s30  ;;  %256 = vrot.lane.b32.xlu0 %v1388_v25, %s1730_s30 }
  0x32   : > { %564 = vrot.lane.b32.xlu1 %v1934_v26, %s1733_s6  ;;  %548 = vrot.lane.b32.xlu0 %v1389_v27, %s1733_s6 }
  0x36   : > { %659 = vrot.lane.b32.xlu1 %v1941_v28, %s1734_s7  ;;  %643 = vrot.lane.b32.xlu0 %v1404_v29, %s1734_s7 }
  0x3a   : > { %274 = vrot.lane.b32.xlu1 %v1934_v26, %s1730_s30  ;;  %258 = vrot.lane.b32.xlu0 %v1389_v27, %s1730_s30 }
  0x3e   : > { %369 = vrot.lane.b32.xlu1 %v1941_v28, %s1731_s4  ;;  %353 = vrot.lane.b32.xlu0 %v1404_v29, %s1731_s4 }
  0x42   : > { %661 = vrot.lane.b32.xlu1 %v1954_v30, %s1734_s7  ;;  %645 = vrot.lane.b32.xlu0 %v1405_v31, %s1734_s7 }
  0x46   : > { %759 = vrot.lane.b32.xlu1 %v1854_v10, %s1735_s8  ;;  %743 = vrot.lane.b32.xlu0 %v1857_v11, %s1735_s8 }
  0x4a   : > { %371 = vrot.lane.b32.xlu1 %v1954_v30, %s1731_s4  ;;  %355 = vrot.lane.b32.xlu0 %v1405_v31, %s1731_s4  ;;  %v1465_v31 = vld [vmem:[%s1819_s29 + $0xb2] sm:$0xff] }
  0x4e   : > { %469 = vrot.lane.b32.xlu1 %v1854_v10, %s1732_s5  ;;  %453 = vrot.lane.b32.xlu0 %v1857_v11, %s1732_s5  ;;  %v1449_v10 = vld [vmem:[%s1819_s29 + $0xb1] sm:$0xff] }
  0x4f   : > { %v1441_v11 = vld [vmem:[%s1819_s29 + $0x51] sm:$0xff] }
  0x52   : > { %761 = vrot.lane.b32.xlu1 %v1860_v12, %s1735_s8  ;;  %745 = vrot.lane.b32.xlu0 %v1863_v13, %s1735_s8 }
  0x56   : > { %856 = vrot.lane.b32.xlu1 %v1446_v32, %s1736_s9  ;;  %840 = vrot.lane.b32.xlu0 %v1438_v33, %s1736_s9 }
  0x5a   : > { %471 = vrot.lane.b32.xlu1 %v1860_v12, %s1732_s5  ;;  %455 = vrot.lane.b32.xlu0 %v1863_v13, %s1732_s5 }
  0x5e   : > { %566 = vrot.lane.b32.xlu1 %v1446_v32, %s1733_s6  ;;  %550 = vrot.lane.b32.xlu0 %v1438_v33, %s1733_s6 }
  0x62   : > { %858 = vrot.lane.b32.xlu1 %v1447_v37, %s1736_s9  ;;  %842 = vrot.lane.b32.xlu0 %v1439_v38, %s1736_s9 }
  0x66   : > { %953 = vrot.lane.b32.xlu1 %v1462_v42, %s1737_s19  ;;  %937 = vrot.lane.b32.xlu0 %v1454_v43, %s1737_s19 }
  0x6a   : > { %276 = vrot.lane.b32.xlu1 %v1446_v32, %s1730_s30  ;;  %260 = vrot.lane.b32.xlu0 %v1438_v33, %s1730_s30  ;;  %v1457_v32 = vld [vmem:[%s1819_s29 + $0x52] sm:$0xff] }
  0x6e   : > { %568 = vrot.lane.b32.xlu1 %v1447_v37, %s1733_s6  ;;  %552 = vrot.lane.b32.xlu0 %v1439_v38, %s1733_s6 }
  0x72   : > { %663 = vrot.lane.b32.xlu1 %v1462_v42, %s1734_s7  ;;  %647 = vrot.lane.b32.xlu0 %v1454_v43, %s1734_s7 }
  0x76   : > { %955 = vrot.lane.b32.xlu1 %v1463_v51, %s1737_s19  ;;  %939 = vrot.lane.b32.xlu0 %v1455_v52, %s1737_s19 }
  0x7a   : > { %278 = vrot.lane.b32.xlu1 %v1447_v37, %s1730_s30  ;;  %262 = vrot.lane.b32.xlu0 %v1439_v38, %s1730_s30 }
  0x7e   : > { %373 = vrot.lane.b32.xlu1 %v1462_v42, %s1731_s4  ;;  %357 = vrot.lane.b32.xlu0 %v1454_v43, %s1731_s4 }
  0x82   : > { %665 = vrot.lane.b32.xlu1 %v1463_v51, %s1734_s7  ;;  %649 = vrot.lane.b32.xlu0 %v1455_v52, %s1734_s7 }
  0x84   : > { %v255_v53 = vpop.permute.xlu1 %254  ;;  %v253_v54 = vpop.permute.xlu0 %252 }
  0x85   : > { %302 = vst.msk [vmem:[#allocation2 + $0x8] sm:$0xff] %vm300_vm1, %v255_v53  ;;  %301 = vst.msk [vmem:[#allocation2] sm:$0xff] %vm300_vm1, %v253_v54 }
  0x86   : > { %763 = vrot.lane.b32.xlu1 %v1884_v18, %s1735_s8  ;;  %747 = vrot.lane.b32.xlu0 %v1887_v19, %s1735_s8 }
  0x88   : > { %v271_v55 = vpop.permute.xlu1 %270  ;;  %v269_v56 = vpop.permute.xlu0 %268 }
  0x89   : > { %310 = vst.msk [vmem:[#allocation2 + $0x48] sm:$0xff] %vm300_vm1, %v271_v55  ;;  %309 = vst.msk [vmem:[#allocation2 + $0x40] sm:$0xff] %vm300_vm1, %v269_v56 }
  0x8a   : > { %375 = vrot.lane.b32.xlu1 %v1463_v51, %s1731_s4  ;;  %359 = vrot.lane.b32.xlu0 %v1455_v52, %s1731_s4  ;;  %v1450_v51 = vld [vmem:[%s1819_s29 + $0xc1] sm:$0xff] }
  0x8c   : > { %v366_v57 = vpop.permute.xlu1 %365  ;;  %v350_v58 = vpop.permute.xlu0 %349 }
  0x8d   : > { %406 = vst.msk [vmem:[#allocation2 + $0x40] sm:$0xff] %vm397_vm2, %v366_v57  ;;  %398 = vst.msk [vmem:[#allocation2] sm:$0xff] %vm397_vm2, %v350_v58  ;;  %v1451_v57 = vld [vmem:[%s1819_s29 + $0xc9] sm:$0xff] }
  0x8e   : > { %473 = vrot.lane.b32.xlu1 %v1884_v18, %s1732_s5  ;;  %457 = vrot.lane.b32.xlu0 %v1887_v19, %s1732_s5 }
  0x90   : > { %v368_v59 = vpop.permute.xlu1 %367  ;;  %v352_v60 = vpop.permute.xlu0 %351 }
  0x91   : > { %407 = vst.msk [vmem:[#allocation2 + $0x48] sm:$0xff] %vm397_vm2, %v368_v59  ;;  %399 = vst.msk [vmem:[#allocation2 + $0x8] sm:$0xff] %vm397_vm2, %v352_v60 }
  0x92   : > { %765 = vrot.lane.b32.xlu1 %v1908_v22, %s1735_s8  ;;  %749 = vrot.lane.b32.xlu0 %v1911_v23, %s1735_s8 }
  0x94   : > { %v466_v63 = vpop.permute.xlu1 %465  ;;  %v450_v0 = vpop.permute.xlu0 %449 }
  0x95   : > { %506 = vst.msk [vmem:[#allocation2 + $0x40] sm:$0xff] %vm497_vm3, %v466_v63  ;;  %498 = vst.msk [vmem:[#allocation2] sm:$0xff] %vm497_vm3, %v450_v0 }
  0x96   : > { %860 = vrot.lane.b32.xlu1 %v1448_v61, %s1736_s9  ;;  %844 = vrot.lane.b32.xlu0 %v1440_v62, %s1736_s9 }
  0x98   : > { %v468_v1 = vpop.permute.xlu1 %467  ;;  %v452_v5 = vpop.permute.xlu0 %451 }
  0x99   : > { %507 = vst.msk [vmem:[#allocation2 + $0x48] sm:$0xff] %vm497_vm3, %v468_v1  ;;  %499 = vst.msk [vmem:[#allocation2 + $0x8] sm:$0xff] %vm497_vm3, %v452_v5 }
  0x9a   : > { %475 = vrot.lane.b32.xlu1 %v1908_v22, %s1732_s5  ;;  %459 = vrot.lane.b32.xlu0 %v1911_v23, %s1732_s5 }
  0x9c   : > { %v563_v7 = vpop.permute.xlu1 %562  ;;  %v547_v9 = vpop.permute.xlu0 %546 }
  0x9d   : > { %603 = vst.msk [vmem:[#allocation2 + $0x40] sm:$0xff] %vm594_vm4, %v563_v7  ;;  %595 = vst.msk [vmem:[#allocation2] sm:$0xff] %vm594_vm4, %v547_v9  ;;  %v1467_v7 = vld [vmem:[%s1819_s29 + $0xca] sm:$0xff] }
  0x9e   : > { %570 = vrot.lane.b32.xlu1 %v1448_v61, %s1733_s6  ;;  %554 = vrot.lane.b32.xlu0 %v1440_v62, %s1733_s6 }
  0xa0   : > { %v273_v12 = vpop.permute.xlu1 %272  ;;  %v257_v13 = vpop.permute.xlu0 %256 }
  0xa1   : > { %311 = vst.msk [vmem:[#allocation2 + $0x50] sm:$0xff] %vm300_vm1, %v273_v12  ;;  %303 = vst.msk [vmem:[#allocation2 + $0x10] sm:$0xff] %vm300_vm1, %v257_v13  ;;  %v1436_v13 = vld [vmem:[%s1819_s29 + $0xd8] sm:$0xff] }
  0xa2   : > { %862 = vrot.lane.b32.xlu1 %v1449_v10, %s1736_s9  ;;  %846 = vrot.lane.b32.xlu0 %v1441_v11, %s1736_s9 }
  0xa4   : > { %v565_v17 = vpop.permute.xlu1 %564  ;;  %v549_v18 = vpop.permute.xlu0 %548 }
  0xa5   : > { %604 = vst.msk [vmem:[#allocation2 + $0x48] sm:$0xff] %vm594_vm4, %v565_v17  ;;  %596 = vst.msk [vmem:[#allocation2 + $0x8] sm:$0xff] %vm594_vm4, %v549_v18  ;;  %v1437_v17 = vld [vmem:[%s1819_s29 + $0xe0] sm:$0xff] }
  0xa6   : > { %957 = vrot.lane.b32.xlu1 %v1464_v15, %s1737_s19  ;;  %941 = vrot.lane.b32.xlu0 %v1456_v16, %s1737_s19 }
  0xa8   : > { %v660_v19 = vpop.permute.xlu1 %659  ;;  %v644_v22 = vpop.permute.xlu0 %643 }
  0xa9   : > { %700 = vst.msk [vmem:[#allocation2 + $0x40] sm:$0xff] %vm691_vm5, %v660_v19  ;;  %692 = vst.msk [vmem:[#allocation2] sm:$0xff] %vm691_vm5, %v644_v22 }
  0xaa   : > { %280 = vrot.lane.b32.xlu1 %v1448_v61, %s1730_s30  ;;  %264 = vrot.lane.b32.xlu0 %v1440_v62, %s1730_s30 }
  0xac   : > { %v275_v23 = vpop.permute.xlu1 %274  ;;  %v259_v25 = vpop.permute.xlu0 %258 }
  0xad   : > { %312 = vst.msk [vmem:[#allocation2 + $0x58] sm:$0xff] %vm300_vm1, %v275_v23  ;;  %304 = vst.msk [vmem:[#allocation2 + $0x18] sm:$0xff] %vm300_vm1, %v259_v25 }
  0xae   : > { %572 = vrot.lane.b32.xlu1 %v1449_v10, %s1733_s6  ;;  %556 = vrot.lane.b32.xlu0 %v1441_v11, %s1733_s6 }
  0xb0   : > { %v370_v27 = vpop.permute.xlu1 %369  ;;  %v354_v29 = vpop.permute.xlu0 %353 }
  0xb1   : > { %408 = vst.msk [vmem:[#allocation2 + $0x50] sm:$0xff] %vm397_vm2, %v370_v27  ;;  %400 = vst.msk [vmem:[#allocation2 + $0x10] sm:$0xff] %vm397_vm2, %v354_v29 }
  0xb2   : > { %667 = vrot.lane.b32.xlu1 %v1464_v15, %s1734_s7  ;;  %651 = vrot.lane.b32.xlu0 %v1456_v16, %s1734_s7 }
  0xb4   : > { %v662_v33 = vpop.permute.xlu1 %661  ;;  %v646_v34 = vpop.permute.xlu0 %645 }
  0xb5   : > { %701 = vst.msk [vmem:[#allocation2 + $0x48] sm:$0xff] %vm691_vm5, %v662_v33  ;;  %693 = vst.msk [vmem:[#allocation2 + $0x8] sm:$0xff] %vm691_vm5, %v646_v34 }
  0xb6   : > { %959 = vrot.lane.b32.xlu1 %v1465_v31, %s1737_s19  ;;  %943 = vrot.lane.b32.xlu0 %v1457_v32, %s1737_s19 }
  0xb8   : > { %v760_v35 = vpop.permute.xlu1 %759  ;;  %v744_v36 = vpop.permute.xlu0 %743 }
  0xb9   : > { %800 = vst.msk [vmem:[#allocation2 + $0x40] sm:$0xff] %vm791_vm6, %v760_v35  ;;  %792 = vst.msk [vmem:[#allocation2] sm:$0xff] %vm791_vm6, %v744_v36 }
  0xba   : > { %282 = vrot.lane.b32.xlu1 %v1449_v10, %s1730_s30  ;;  %266 = vrot.lane.b32.xlu0 %v1441_v11, %s1730_s30 }
  0xbc   : > { %v372_v37 = vpop.permute.xlu1 %371  ;;  %v356_v38 = vpop.permute.xlu0 %355 }
  0xbd   : > { %409 = vst.msk [vmem:[#allocation2 + $0x58] sm:$0xff] %vm397_vm2, %v372_v37  ;;  %401 = vst.msk [vmem:[#allocation2 + $0x18] sm:$0xff] %vm397_vm2, %v356_v38 }
  0xbe   : > { %377 = vrot.lane.b32.xlu1 %v1464_v15, %s1731_s4  ;;  %361 = vrot.lane.b32.xlu0 %v1456_v16, %s1731_s4 }
  0xc0   : > { %v470_v39 = vpop.permute.xlu1 %469  ;;  %v454_v40 = vpop.permute.xlu0 %453 }
  0xc1   : > { %508 = vst.msk [vmem:[#allocation2 + $0x50] sm:$0xff] %vm497_vm3, %v470_v39  ;;  %500 = vst.msk [vmem:[#allocation2 + $0x10] sm:$0xff] %vm497_vm3, %v454_v40 }
  0xc2   : > { %669 = vrot.lane.b32.xlu1 %v1465_v31, %s1734_s7  ;;  %653 = vrot.lane.b32.xlu0 %v1457_v32, %s1734_s7 }
  0xc4   : > { %v762_v42 = vpop.permute.xlu1 %761  ;;  %v746_v43 = vpop.permute.xlu0 %745 }
  0xc5   : > { %801 = vst.msk [vmem:[#allocation2 + $0x48] sm:$0xff] %vm791_vm6, %v762_v42  ;;  %793 = vst.msk [vmem:[#allocation2 + $0x8] sm:$0xff] %vm791_vm6, %v746_v43 }
  0xc6   : > { %767 = vrot.lane.b32.xlu1 %v1434_v41, %s1735_s8  ;;  %751 = vrot.lane.b32.xlu0 %v1897_v21, %s1735_s8 }
  0xc8   : > { %v857_v44 = vpop.permute.xlu1 %856  ;;  %v841_v45 = vpop.permute.xlu0 %840 }
  0xc9   : > { %897 = vst.msk [vmem:[#allocation2 + $0x40] sm:$0xff] %vm888_vm7, %v857_v44  ;;  %889 = vst.msk [vmem:[#allocation2] sm:$0xff] %vm888_vm7, %v841_v45 }
  0xca   : > { %379 = vrot.lane.b32.xlu1 %v1465_v31, %s1731_s4  ;;  %363 = vrot.lane.b32.xlu0 %v1457_v32, %s1731_s4 }
  0xcc   : > { %v472_v46 = vpop.permute.xlu1 %471  ;;  %v456_v47 = vpop.permute.xlu0 %455 }
  0xcd   : > { %509 = vst.msk [vmem:[#allocation2 + $0x58] sm:$0xff] %vm497_vm3, %v472_v46  ;;  %501 = vst.msk [vmem:[#allocation2 + $0x18] sm:$0xff] %vm497_vm3, %v456_v47 }
  0xce   : > { %477 = vrot.lane.b32.xlu1 %v1434_v41, %s1732_s5  ;;  %461 = vrot.lane.b32.xlu0 %v1897_v21, %s1732_s5 }
  0xd0   : > { %v567_v49 = vpop.permute.xlu1 %566  ;;  %v551_v50 = vpop.permute.xlu0 %550 }
  0xd1   : > { %605 = vst.msk [vmem:[#allocation2 + $0x50] sm:$0xff] %vm594_vm4, %v567_v49  ;;  %597 = vst.msk [vmem:[#allocation2 + $0x10] sm:$0xff] %vm594_vm4, %v551_v50 }
  0xd2   : > { %769 = vrot.lane.b32.xlu1 %v1435_v48, %s1735_s8  ;;  %753 = vrot.lane.b32.xlu0 %v1894_v20, %s1735_s8 }
  0xd4   : > { %v859_v52 = vpop.permute.xlu1 %858  ;;  %v843_v53 = vpop.permute.xlu0 %842 }
  0xd5   : > { %898 = vst.msk [vmem:[#allocation2 + $0x48] sm:$0xff] %vm888_vm7, %v859_v52  ;;  %890 = vst.msk [vmem:[#allocation2 + $0x8] sm:$0xff] %vm888_vm7, %v843_v53 }
  0xd6   : > { %864 = vrot.lane.b32.xlu1 %v1450_v51, %s1736_s9  ;;  %848 = vrot.lane.b32.xlu0 %v1829_v3, %s1736_s9 }
  0xd8   : > { %v954_v21 = vpop.permute.xlu1 %953  ;;  %v938_v54 = vpop.permute.xlu0 %937 }
  0xd9   : > { %994 = vst.msk [vmem:[#allocation2 + $0x40] sm:$0xff] %vm985_vm8, %v954_v21  ;;  %986 = vst.msk [vmem:[#allocation2] sm:$0xff] %vm985_vm8, %v938_v54 }
  0xda   : > { %479 = vrot.lane.b32.xlu1 %v1435_v48, %s1732_s5  ;;  %463 = vrot.lane.b32.xlu0 %v1894_v20, %s1732_s5 }
  0xdc   : > { %v277_v55 = vpop.permute.xlu1 %276  ;;  %v261_v56 = vpop.permute.xlu0 %260 }
  0xdd   : > { %313 = vst.msk [vmem:[#allocation2 + $0x60] sm:$0xff] %vm300_vm1, %v277_v55  ;;  %305 = vst.msk [vmem:[#allocation2 + $0x20] sm:$0xff] %vm300_vm1, %v261_v56 }
  0xde   : > { %574 = vrot.lane.b32.xlu1 %v1450_v51, %s1733_s6  ;;  %558 = vrot.lane.b32.xlu0 %v1829_v3, %s1733_s6  ;;  %v1466_v3 = vld [vmem:[%s1819_s29 + $0xc2] sm:$0xff] }
  0xe0   : > { %v569_v58 = vpop.permute.xlu1 %568  ;;  %v553_v59 = vpop.permute.xlu0 %552  ;;  %v1002_v60 = vld [vmem:[#allocation2] sm:$0xff] }
  0xe1   : > { %v1010_v61 = vld [vmem:[#allocation2 + $0x40] sm:$0xff]  ;;  %606 = vst.msk [vmem:[#allocation2 + $0x58] sm:$0xff] %vm594_vm4, %v569_v58  ;;  %598 = vst.msk [vmem:[#allocation2 + $0x18] sm:$0xff] %vm594_vm4, %v553_v59  ;;  %1536 = vmatprep.mubr.msk.f32.mxu0 %vm1034_vm9, %v1002_v60 }
  0xe2   : > { %1548 = vmatprep.mubr.msk.f32.mxu1 %vm1034_vm9, %v1010_v61  ;;  %866 = vrot.lane.b32.xlu1 %v1451_v57, %s1736_s9 }
  0xe3   : > { %850 = vrot.lane.b32.xlu0 %v1826_v2, %s1736_s9 }
  0xe4   : > { %v664_v20 = vpop.permute.xlu1 %663  ;;  %v648_v62 = vpop.permute.xlu0 %647 }
  0xe5   : > { %702 = vst.msk [vmem:[#allocation2 + $0x50] sm:$0xff] %vm691_vm5, %v664_v20  ;;  %694 = vst.msk [vmem:[#allocation2 + $0x10] sm:$0xff] %vm691_vm5, %v648_v62 }
  0xe6   : > { %961 = vrot.lane.b32.xlu1 %v1466_v3, %s1737_s19 }
  0xe7   : > { %945 = vrot.lane.b32.xlu0 %v1850_v8, %s1737_s19 }
  0xe8   : > { %v956_v63 = vpop.permute.xlu1 %955  ;;  %v940_v0 = vpop.permute.xlu0 %939 }
  0xe9   : > { %995 = vst.msk [vmem:[#allocation2 + $0x48] sm:$0xff] %vm985_vm8, %v956_v63  ;;  %987 = vst.msk [vmem:[#allocation2 + $0x8] sm:$0xff] %vm985_vm8, %v940_v0 }
  0xea   : > { %576 = vrot.lane.b32.xlu1 %v1451_v57, %s1733_s6 }
  0xeb   : > { %560 = vrot.lane.b32.xlu0 %v1826_v2, %s1733_s6 }
  0xec   : > { %v279_v1 = vpop.permute.xlu1 %278  ;;  %v263_v5 = vpop.permute.xlu0 %262 }
  0xed   : > { %314 = vst.msk [vmem:[#allocation2 + $0x68] sm:$0xff] %vm300_vm1, %v279_v1  ;;  %306 = vst.msk [vmem:[#allocation2 + $0x28] sm:$0xff] %vm300_vm1, %v263_v5 }
  0xee   : > { %671 = vrot.lane.b32.xlu1 %v1466_v3, %s1734_s7 }
  0xef   : > { %655 = vrot.lane.b32.xlu0 %v1850_v8, %s1734_s7 }
  0xf0   : > { %v374_v9 = vpop.permute.xlu1 %373  ;;  %v358_v10 = vpop.permute.xlu0 %357  ;;  %v1003_v11 = vld [vmem:[#allocation2 + $0x8] sm:$0xff] }
  0xf1   : > { %v1011_v12 = vld [vmem:[#allocation2 + $0x48] sm:$0xff]  ;;  %410 = vst.msk [vmem:[#allocation2 + $0x60] sm:$0xff] %vm397_vm2, %v374_v9  ;;  %402 = vst.msk [vmem:[#allocation2 + $0x20] sm:$0xff] %vm397_vm2, %v358_v10  ;;  %1537 = vmatmul.mubr.msk.f32.vlgmr.msra.gmra.mrb[0].mxu0 %vm1034_vm9, %v1003_v11 }
  0xf2   : > { %1549 = vmatmul.mubr.msk.f32.vlgmr.msra.gmra.mrb[0].mxu1 %vm1034_vm9, %v1011_v12  ;;  %963 = vrot.lane.b32.xlu1 %v1467_v7, %s1737_s19 }
  0xf3   : > { %947 = vrot.lane.b32.xlu0 %v1877_v14, %s1737_s19 }
  0xf4   : > { %v666_v2 = vpop.permute.xlu1 %665  ;;  %v650_v8 = vpop.permute.xlu0 %649 }
  0xf5   : > { %703 = vst.msk [vmem:[#allocation2 + $0x58] sm:$0xff] %vm691_vm5, %v666_v2  ;;  %695 = vst.msk [vmem:[#allocation2 + $0x18] sm:$0xff] %vm691_vm5, %v650_v8 }
  0xf6   : > { %673 = vrot.lane.b32.xlu1 %v1467_v7, %s1734_s7 }
  0xf7   : > { %657 = vrot.lane.b32.xlu0 %v1877_v14, %s1734_s7  ;;  %v1452_v14 = vld [vmem:[%s1819_s29 + $0xd9] sm:$0xff] }
  0xf8   : > { %v764_v15 = vpop.permute.xlu1 %763  ;;  %v748_v16 = vpop.permute.xlu0 %747 }
  0xf9   : > { %802 = vst.msk [vmem:[#allocation2 + $0x50] sm:$0xff] %vm791_vm6, %v764_v15  ;;  %794 = vst.msk [vmem:[#allocation2 + $0x10] sm:$0xff] %vm791_vm6, %v748_v16 }
  0xfa   : > { %771 = vrot.lane.b32.xlu1 %v1436_v13, %s1735_s8 }
  0xfb   : > { %755 = vrot.lane.b32.xlu0 %v1832_v4, %s1735_s8  ;;  %v1453_v4 = vld [vmem:[%s1819_s29 + $0xe1] sm:$0xff] }
  0xfc   : > { %v376_v18 = vpop.permute.xlu1 %375  ;;  %v360_v19 = vpop.permute.xlu0 %359 }
  0xfd   : > { %411 = vst.msk [vmem:[#allocation2 + $0x68] sm:$0xff] %vm397_vm2, %v376_v18  ;;  %403 = vst.msk [vmem:[#allocation2 + $0x28] sm:$0xff] %vm397_vm2, %v360_v19 }
  0xfe   : > { %773 = vrot.lane.b32.xlu1 %v1437_v17, %s1735_s8 }
  0xff   : > { %757 = vrot.lane.b32.xlu0 %v1836_v6, %s1735_s8  ;;  %v1468_v6 = vld [vmem:[%s1819_s29 + $0xda] sm:$0xff]  ;;  %s1492_s8 = sshll.u32 %s1720_s15, 11 }
 0x100   : > { %v474_v22 = vpop.permute.xlu1 %473  ;;  %v458_v23 = vpop.permute.xlu0 %457 }
 0x101   : > { %510 = vst.msk [vmem:[#allocation2 + $0x60] sm:$0xff] %vm497_vm3, %v474_v22  ;;  %502 = vst.msk [vmem:[#allocation2 + $0x20] sm:$0xff] %vm497_vm3, %v458_v23 }
 0x102   : > { %868 = vrot.lane.b32.xlu1 %v1452_v14, %s1736_s9 }
 0x103   : > { %852 = vrot.lane.b32.xlu0 %v1924_v24, %s1736_s9  ;;  %v1469_v24 = vld [vmem:[%s1819_s29 + $0xe2] sm:$0xff]  ;;  %s175_s29 = sand.u32 1, %s1712_s13  }
 0x104   : > { %v766_v25 = vpop.permute.xlu1 %765  ;;  %v750_v27 = vpop.permute.xlu0 %749  ;;  %s1367_s6 = sshll.u32 %s175_s29, 7  ;;  %s2331_s15 = scalar_lea.sflag [#allocation4], %s175_s29 }
 0x105   : > { %803 = vst.msk [vmem:[#allocation2 + $0x58] sm:$0xff] %vm791_vm6, %v766_v25  ;;  %795 = vst.msk [vmem:[#allocation2 + $0x18] sm:$0xff] %vm791_vm6, %v750_v27  ;;  %s2302_s7 = scalar_lea.vmem [#allocation3], %s1367_s6 }
 0x106   : > { %870 = vrot.lane.b32.xlu1 %v1453_v4, %s1736_s9 }
 0x107   : > { %854 = vrot.lane.b32.xlu0 %v1934_v26, %s1736_s9  ;;  %s1276_s9 = sshll.u32 %s2302_s7, 4  ;;  %s2323_s9 = int_to_ptr.vmem [resolvable:$true] %s1276_s9 }
 0x108   : > { %v861_v29 = vpop.permute.xlu1 %860  ;;  %v845_v31 = vpop.permute.xlu0 %844  ;;  %s1650_s21 = scalar_lea.vmem %s2323_s9, 2048  ;;  %p1657_p0 = scmp.lt.s32.totalorder %s2323_s9, %s1655_s26 }
 0x109   : > { %899 = vst.msk [vmem:[#allocation2 + $0x50] sm:$0xff] %vm888_vm7, %v861_v29  ;;  %891 = vst.msk [vmem:[#allocation2 + $0x10] sm:$0xff] %vm888_vm7, %v845_v31  ;;  %p1651_p11 = scmp.ne.s32.totalorder %s2323_s9, %s1650_s21  ;;  %p1658_p1 = scmp.lt.s32.totalorder %s1656_s27, %s1650_s21 }
 0x10a   : > { %965 = vrot.lane.b32.xlu1 %v1468_v6, %s1737_s19 }
 0x10b   : > { %949 = vrot.lane.b32.xlu0 %v1941_v28, %s1737_s19  ;;  %p1652_p12 = pnand %p1651_p11, %p1800_p4  ;;  %p1659_p2 = por %p1658_p1, %p1657_p0 }
 0x10c   : > { %v476_v32 = vpop.permute.xlu1 %475  ;;  %v460_v33 = vpop.permute.xlu0 %459 }
 0x10d   : > { %511 = vst.msk [vmem:[#allocation2 + $0x68] sm:$0xff] %vm497_vm3, %v476_v32  ;;  %503 = vst.msk [vmem:[#allocation2 + $0x28] sm:$0xff] %vm497_vm3, %v460_v33  ;;  %p1653_p13 = pneg %p1652_p12 }
 0x10e   : > { %967 = vrot.lane.b32.xlu1 %v1469_v24, %s1737_s19 }
 0x10f   : > { %951 = vrot.lane.b32.xlu0 %v1954_v30, %s1737_s19  ;;  %s2321_s19 = scalar_lea.hbm %s2381_s3, %s1492_s8  ;;  %p1660_p3 = pnand %p1659_p2, %p1653_p13 }
 0x110   : > { %v571_v26 = vpop.permute.xlu1 %570  ;;  %v555_v34 = vpop.permute.xlu0 %554 }
 0x111   : > { %607 = vst.msk [vmem:[#allocation2 + $0x60] sm:$0xff] %vm594_vm4, %v571_v26  ;;  %599 = vst.msk [vmem:[#allocation2 + $0x20] sm:$0xff] %vm594_vm4, %v555_v34 }
 0x114   : > { %v863_v35 = vpop.permute.xlu1 %862  ;;  %v847_v28 = vpop.permute.xlu0 %846 }
 0x115   : > { %900 = vst.msk [vmem:[#allocation2 + $0x58] sm:$0xff] %vm888_vm7, %v863_v35  ;;  %892 = vst.msk [vmem:[#allocation2 + $0x18] sm:$0xff] %vm888_vm7, %v847_v28 }
 0x118   : > { %v958_v36 = vpop.permute.xlu1 %957  ;;  %v942_v37 = vpop.permute.xlu0 %941 }
 0x119   : > { %996 = vst.msk [vmem:[#allocation2 + $0x50] sm:$0xff] %vm985_vm8, %v958_v36  ;;  %988 = vst.msk [vmem:[#allocation2 + $0x10] sm:$0xff] %vm985_vm8, %v942_v37 }
 0x11c   : > { %v281_v38 = vpop.permute.xlu1 %280  ;;  %v265_v30 = vpop.permute.xlu0 %264 }
 0x11d   : > { %315 = vst.msk [vmem:[#allocation2 + $0x70] sm:$0xff] %vm300_vm1, %v281_v38  ;;  %307 = vst.msk [vmem:[#allocation2 + $0x30] sm:$0xff] %vm300_vm1, %v265_v30  ;;  %v1470_v38 = vld [vmem:[%s2380_s2] ss:$0 sm:$0xff] }
 0x120   : > { %v573_v39 = vpop.permute.xlu1 %572  ;;  %v557_v40 = vpop.permute.xlu0 %556  ;;  %v1004_v41 = vld [vmem:[#allocation2 + $0x10] sm:$0xff] }
 0x121   : > { %v1012_v42 = vld [vmem:[#allocation2 + $0x50] sm:$0xff]  ;;  %608 = vst.msk [vmem:[#allocation2 + $0x68] sm:$0xff] %vm594_vm4, %v573_v39  ;;  %600 = vst.msk [vmem:[#allocation2 + $0x28] sm:$0xff] %vm594_vm4, %v557_v40  ;;  %1539 = vmatprep.mubr.msk.f32.mxu0 %vm1034_vm9, %v1004_v41 }
 0x122   : > { %1551 = vmatprep.mubr.msk.f32.mxu1 %vm1034_vm9, %v1012_v42 }
 0x124   : > { %v668_v43 = vpop.permute.xlu1 %667  ;;  %v652_v44 = vpop.permute.xlu0 %651 }
 0x125   : > { %704 = vst.msk [vmem:[#allocation2 + $0x60] sm:$0xff] %vm691_vm5, %v668_v43  ;;  %696 = vst.msk [vmem:[#allocation2 + $0x20] sm:$0xff] %vm691_vm5, %v652_v44 }
 0x128   : > { %v960_v45 = vpop.permute.xlu1 %959  ;;  %v944_v46 = vpop.permute.xlu0 %943 }
 0x129   : > { %997 = vst.msk [vmem:[#allocation2 + $0x58] sm:$0xff] %vm985_vm8, %v960_v45  ;;  %989 = vst.msk [vmem:[#allocation2 + $0x18] sm:$0xff] %vm985_vm8, %v944_v46 }
 0x12c   : > { %v283_v47 = vpop.permute.xlu1 %282  ;;  %v267_v48 = vpop.permute.xlu0 %266 }
 0x12d   : > { %316 = vst.msk [vmem:[#allocation2 + $0x78] sm:$0xff] %vm300_vm1, %v283_v47  ;;  %308 = vst.msk [vmem:[#allocation2 + $0x38] sm:$0xff] %vm300_vm1, %v267_v48 }
 0x130   : > { %v378_v49 = vpop.permute.xlu1 %377  ;;  %v362_v50 = vpop.permute.xlu0 %361  ;;  %v1005_v51 = vld [vmem:[#allocation2 + $0x18] sm:$0xff] }
 0x131   : > { %v1013_v52 = vld [vmem:[#allocation2 + $0x58] sm:$0xff]  ;;  %412 = vst.msk [vmem:[#allocation2 + $0x70] sm:$0xff] %vm397_vm2, %v378_v49  ;;  %404 = vst.msk [vmem:[#allocation2 + $0x30] sm:$0xff] %vm397_vm2, %v362_v50  ;;  %1540 = vmatmul.mubr.msk.f32.gmra.mrb[2].mxu0 %vm1034_vm9, %v1005_v51 }
 0x132   : > { %1552 = vmatmul.mubr.msk.f32.gmra.mrb[2].mxu1 %vm1034_vm9, %v1013_v52 }
 0x134   : > { %v670_v53 = vpop.permute.xlu1 %669  ;;  %v654_v21 = vpop.permute.xlu0 %653 }
 0x135   : > { %705 = vst.msk [vmem:[#allocation2 + $0x68] sm:$0xff] %vm691_vm5, %v670_v53  ;;  %697 = vst.msk [vmem:[#allocation2 + $0x28] sm:$0xff] %vm691_vm5, %v654_v21 }
 0x138   : > { %v768_v54 = vpop.permute.xlu1 %767  ;;  %v752_v55 = vpop.permute.xlu0 %751 }
 0x139   : > { %804 = vst.msk [vmem:[#allocation2 + $0x60] sm:$0xff] %vm791_vm6, %v768_v54  ;;  %796 = vst.msk [vmem:[#allocation2 + $0x20] sm:$0xff] %vm791_vm6, %v752_v55 }
 0x13c   : > { %v380_v56 = vpop.permute.xlu1 %379  ;;  %v364_v57 = vpop.permute.xlu0 %363 }
 0x13d   : > { %413 = vst.msk [vmem:[#allocation2 + $0x78] sm:$0xff] %vm397_vm2, %v380_v56  ;;  %405 = vst.msk [vmem:[#allocation2 + $0x38] sm:$0xff] %vm397_vm2, %v364_v57 }
 0x140   : > { %v478_v58 = vpop.permute.xlu1 %477  ;;  %v462_v59 = vpop.permute.xlu0 %461 }
 0x141   : > { %512 = vst.msk [vmem:[#allocation2 + $0x70] sm:$0xff] %vm497_vm3, %v478_v58  ;;  %504 = vst.msk [vmem:[#allocation2 + $0x30] sm:$0xff] %vm497_vm3, %v462_v59 }
 0x144   : > { %v770_v60 = vpop.permute.xlu1 %769  ;;  %v754_v61 = vpop.permute.xlu0 %753 }
 0x145   : > { %805 = vst.msk [vmem:[#allocation2 + $0x68] sm:$0xff] %vm791_vm6, %v770_v60  ;;  %797 = vst.msk [vmem:[#allocation2 + $0x28] sm:$0xff] %vm791_vm6, %v754_v61 }
 0x148   : > { %v865_v3 = vpop.permute.xlu1 %864  ;;  %v849_v20 = vpop.permute.xlu0 %848 }
 0x149   : > { %901 = vst.msk [vmem:[#allocation2 + $0x60] sm:$0xff] %vm888_vm7, %v865_v3  ;;  %893 = vst.msk [vmem:[#allocation2 + $0x20] sm:$0xff] %vm888_vm7, %v849_v20 }
 0x14c   : > { %v480_v62 = vpop.permute.xlu1 %479  ;;  %v464_v63 = vpop.permute.xlu0 %463 }
 0x14d   : > { %513 = vst.msk [vmem:[#allocation2 + $0x78] sm:$0xff] %vm497_vm3, %v480_v62  ;;  %505 = vst.msk [vmem:[#allocation2 + $0x38] sm:$0xff] %vm497_vm3, %v464_v63 }
 0x150   : > { %v575_v0 = vpop.permute.xlu1 %574  ;;  %v559_v1 = vpop.permute.xlu0 %558 }
 0x151   : > { %609 = vst.msk [vmem:[#allocation2 + $0x70] sm:$0xff] %vm594_vm4, %v575_v0  ;;  %601 = vst.msk [vmem:[#allocation2 + $0x30] sm:$0xff] %vm594_vm4, %v559_v1 }
 0x154   : > { %v867_v5 = vpop.permute.xlu1 %866 }
 0x155   : > { %v851_v7 = vpop.permute.xlu0 %850  ;;  %902 = vst.msk [vmem:[#allocation2 + $0x68] sm:$0xff] %vm888_vm7, %v867_v5 }
 0x156   : > { %894 = vst.msk [vmem:[#allocation2 + $0x28] sm:$0xff] %vm888_vm7, %v851_v7 }
 0x158   : > { %v962_v9 = vpop.permute.xlu1 %961 }
 0x159   : > { %v946_v10 = vpop.permute.xlu0 %945  ;;  %998 = vst.msk [vmem:[#allocation2 + $0x60] sm:$0xff] %vm985_vm8, %v962_v9 }
 0x15a   : > { %990 = vst.msk [vmem:[#allocation2 + $0x20] sm:$0xff] %vm985_vm8, %v946_v10 }
 0x15c   : > { %v577_v11 = vpop.permute.xlu1 %576 }
 0x15d   : > { %v561_v12 = vpop.permute.xlu0 %560  ;;  %610 = vst.msk [vmem:[#allocation2 + $0x78] sm:$0xff] %vm594_vm4, %v577_v11 }
 0x15e   : > { %602 = vst.msk [vmem:[#allocation2 + $0x38] sm:$0xff] %vm594_vm4, %v561_v12 }
 0x160   : > { %v672_v2 = vpop.permute.xlu1 %671  ;;  %v1014_v15 = vld [vmem:[#allocation2 + $0x60] sm:$0xff] }
 0x161   : > { %v656_v8 = vpop.permute.xlu0 %655  ;;  %v1006_v13 = vld [vmem:[#allocation2 + $0x20] sm:$0xff]  ;;  %706 = vst.msk [vmem:[#allocation2 + $0x70] sm:$0xff] %vm691_vm5, %v672_v2  ;;  %1554 = vmatprep.mubr.msk.f32.mxu1 %vm1034_vm9, %v1014_v15 }
 0x162   : > { %698 = vst.msk [vmem:[#allocation2 + $0x30] sm:$0xff] %vm691_vm5, %v656_v8  ;;  %1542 = vmatprep.mubr.msk.f32.mxu0 %vm1034_vm9, %v1006_v13 }
 0x164   : > { %v964_v16 = vpop.permute.xlu1 %963 }
 0x165   : > { %v948_v17 = vpop.permute.xlu0 %947  ;;  %999 = vst.msk [vmem:[#allocation2 + $0x68] sm:$0xff] %vm985_vm8, %v964_v16 }
 0x166   : > { %991 = vst.msk [vmem:[#allocation2 + $0x28] sm:$0xff] %vm985_vm8, %v948_v17 }
 0x168   : > { %v674_v18 = vpop.permute.xlu1 %673 }
 0x169   : > { %v658_v19 = vpop.permute.xlu0 %657  ;;  %707 = vst.msk [vmem:[#allocation2 + $0x78] sm:$0xff] %vm691_vm5, %v674_v18 }
 0x16a   : > { %699 = vst.msk [vmem:[#allocation2 + $0x38] sm:$0xff] %vm691_vm5, %v658_v19 }
 0x16c   : > { %v772_v14 = vpop.permute.xlu1 %771  ;;  %v1015_v4 = vld [vmem:[#allocation2 + $0x68] sm:$0xff] }
 0x16d   : > { %v756_v22 = vpop.permute.xlu0 %755  ;;  %v1007_v23 = vld [vmem:[#allocation2 + $0x28] sm:$0xff]  ;;  %806 = vst.msk [vmem:[#allocation2 + $0x70] sm:$0xff] %vm791_vm6, %v772_v14  ;;  %1555 = vmatmul.mubr.msk.f32.gmra.mrb[4].mxu1 %vm1034_vm9, %v1015_v4 }
 0x16e   : > { %798 = vst.msk [vmem:[#allocation2 + $0x30] sm:$0xff] %vm791_vm6, %v756_v22  ;;  %1543 = vmatmul.mubr.msk.f32.gmra.mrb[4].mxu0 %vm1034_vm9, %v1007_v23 }
 0x170   : > { %v774_v25 = vpop.permute.xlu1 %773 }
 0x171   : > { %v758_v27 = vpop.permute.xlu0 %757  ;;  %807 = vst.msk [vmem:[#allocation2 + $0x78] sm:$0xff] %vm791_vm6, %v774_v25 }
 0x172   : > { %799 = vst.msk [vmem:[#allocation2 + $0x38] sm:$0xff] %vm791_vm6, %v758_v27 }
 0x174   : > { %v869_v6 = vpop.permute.xlu1 %868 }
 0x175   : > { %v853_v29 = vpop.permute.xlu0 %852  ;;  %903 = vst.msk [vmem:[#allocation2 + $0x70] sm:$0xff] %vm888_vm7, %v869_v6 }
 0x176   : > { %895 = vst.msk [vmem:[#allocation2 + $0x30] sm:$0xff] %vm888_vm7, %v853_v29 }
 0x178   : > { %v871_v31 = vpop.permute.xlu1 %870 }
 0x179   : > { %v855_v24 = vpop.permute.xlu0 %854  ;;  %904 = vst.msk [vmem:[#allocation2 + $0x78] sm:$0xff] %vm888_vm7, %v871_v31 }
 0x17a   : > { %896 = vst.msk [vmem:[#allocation2 + $0x38] sm:$0xff] %vm888_vm7, %v855_v24 }
 0x17c   : > { %v966_v32 = vpop.permute.xlu1 %965 }
 0x17d   : > { %v950_v33 = vpop.permute.xlu0 %949  ;;  %1000 = vst.msk [vmem:[#allocation2 + $0x70] sm:$0xff] %vm985_vm8, %v966_v32 }
 0x17e   : > { %992 = vst.msk [vmem:[#allocation2 + $0x30] sm:$0xff] %vm985_vm8, %v950_v33 }
 0x180   : > { %v968_v26 = vpop.permute.xlu1 %967 }
 0x181   : > { %v952_v34 = vpop.permute.xlu0 %951  ;;  %1001 = vst.msk [vmem:[#allocation2 + $0x78] sm:$0xff] %vm985_vm8, %v968_v26 }
 0x182   : > { %993 = vst.msk [vmem:[#allocation2 + $0x38] sm:$0xff] %vm985_vm8, %v952_v34 }
 0x184   : > { %v1016_v28 = vld [vmem:[#allocation2 + $0x70] sm:$0xff] }
 0x185   : > { %v1008_v35 = vld [vmem:[#allocation2 + $0x30] sm:$0xff]  ;;  %1557 = vmatprep.mubr.msk.f32.mxu1 %vm1034_vm9, %v1016_v28 }
 0x186   : > { %1545 = vmatprep.mubr.msk.f32.mxu0 %vm1034_vm9, %v1008_v35 }
 0x188   : > { %v1017_v37 = vld [vmem:[#allocation2 + $0x78] sm:$0xff] }
 0x189   : > { %v1009_v36 = vld [vmem:[#allocation2 + $0x38] sm:$0xff]  ;;  %1558 = vmatmul.mubr.msk.f32.gmra.mrb[6].mxu1 %vm1034_vm9, %v1017_v37 }
 0x18a   : > { %1546 = vmatmul.mubr.msk.f32.gmra.mrb[6].mxu0 %vm1034_vm9, %v1009_v36 }
 0x1c4   : > { %v1538_v30 = vpop.f32.mrb[0].mxu0 }
 0x1c5   : > { %v1550_v39 = vpop.f32.mrb[0].mxu1  ;;  %v1155_v40 = vadd.f32 %v1538_v30, %v1470_v38  ;;  %v1149_v42 = vpop.f32.mrb[1].mxu0 }
 0x1c6   : > { %v1195_v41 = vadd.f32 %v1550_v39, %v1470_v38  ;;  %v1189_v43 = vpop.f32.mrb[1].mxu1  ;;  %v1150_v44 = vadd.f32 %v1470_v38, %v1149_v42 }
 0x1c7   : > { %v1190_v45 = vadd.f32 %v1470_v38, %v1189_v43  ;;  %v1229_v46 = vmax.f32 %v1155_v40, 0.0 }
 0x1c8   : > { %v1237_v47 = vmax.f32 %v1195_v41, 0.0  ;;  %v1228_v48 = vmax.f32 %v1150_v44, 0.0 }
 0x1c9   : > { %v1236_v49 = vmax.f32 %v1190_v45, 0.0  ;;  %1245 = vst [vmem:[%s2302_s7 + $0x8] sm:$0xff] %v1229_v46 }
 0x1ca   : > { %1253 = vst [vmem:[%s2302_s7 + $0x48] sm:$0xff] %v1237_v47  ;;  %1244 = vst [vmem:[%s2302_s7] sm:$0xff] %v1228_v48 }
 0x1cb   : > { %1252 = vst [vmem:[%s2302_s7 + $0x40] sm:$0xff] %v1236_v49 }
 0x204   : > { %v1541_v50 = vpop.f32.mrb[2].mxu0 }
 0x205   : > { %v1553_v51 = vpop.f32.mrb[2].mxu1  ;;  %v1165_v52 = vadd.f32 %v1541_v50, %v1470_v38  ;;  %v1159_v21 = vpop.f32.mrb[3].mxu0 }
 0x206   : > { %v1205_v53 = vadd.f32 %v1553_v51, %v1470_v38  ;;  %v1199_v54 = vpop.f32.mrb[3].mxu1  ;;  %v1160_v55 = vadd.f32 %v1470_v38, %v1159_v21 }
 0x207   : > { %v1200_v56 = vadd.f32 %v1470_v38, %v1199_v54  ;;  %v1231_v57 = vmax.f32 %v1165_v52, 0.0 }
 0x208   : > { %v1239_v58 = vmax.f32 %v1205_v53, 0.0  ;;  %v1230_v59 = vmax.f32 %v1160_v55, 0.0 }
 0x209   : > { %v1238_v60 = vmax.f32 %v1200_v56, 0.0  ;;  %1247 = vst [vmem:[%s2302_s7 + $0x18] sm:$0xff] %v1231_v57 }
 0x20a   : > { %1255 = vst [vmem:[%s2302_s7 + $0x58] sm:$0xff] %v1239_v58  ;;  %1246 = vst [vmem:[%s2302_s7 + $0x10] sm:$0xff] %v1230_v59 }
 0x20b   : > { %1254 = vst [vmem:[%s2302_s7 + $0x50] sm:$0xff] %v1238_v60 }
 0x240   : > { %v1556_v3 = vpop.f32.mrb[4].mxu1 }
 0x241   : > { %v1544_v61 = vpop.f32.mrb[4].mxu0  ;;  %v1215_v62 = vadd.f32 %v1556_v3, %v1470_v38  ;;  %v1209_v0 = vpop.f32.mrb[5].mxu1 }
 0x242   : > { %v1175_v20 = vadd.f32 %v1544_v61, %v1470_v38  ;;  %v1169_v63 = vpop.f32.mrb[5].mxu0  ;;  %v1210_v5 = vadd.f32 %v1470_v38, %v1209_v0 }
 0x243   : > { %v1170_v1 = vadd.f32 %v1470_v38, %v1169_v63  ;;  %v1241_v9 = vmax.f32 %v1215_v62, 0.0 }
 0x244   : > { %v1233_v7 = vmax.f32 %v1175_v20, 0.0  ;;  %v1240_v11 = vmax.f32 %v1210_v5, 0.0 }
 0x245   : > { %v1232_v10 = vmax.f32 %v1170_v1, 0.0  ;;  %1257 = vst [vmem:[%s2302_s7 + $0x68] sm:$0xff] %v1241_v9 }
 0x246   : > { %1249 = vst [vmem:[%s2302_s7 + $0x28] sm:$0xff] %v1233_v7  ;;  %1256 = vst [vmem:[%s2302_s7 + $0x60] sm:$0xff] %v1240_v11 }
 0x247   : > { %1248 = vst [vmem:[%s2302_s7 + $0x20] sm:$0xff] %v1232_v10 }
 0x25c   : > { %v1559_v2 = vpop.f32.mrb[6].mxu1 }
 0x25d   : > { %v1547_v12 = vpop.f32.mrb[6].mxu0  ;;  %v1225_v13 = vadd.f32 %v1559_v2, %v1470_v38  ;;  %v1219_v16 = vpop.f32.mrb[7].mxu1 }
 0x25e   : > { %v1185_v8 = vadd.f32 %v1547_v12, %v1470_v38  ;;  %v1179_v15 = vpop.f32.mrb[7].mxu0  ;;  %v1220_v18 = vadd.f32 %v1470_v38, %v1219_v16 }
 0x25f   : > { %v1180_v17 = vadd.f32 %v1470_v38, %v1179_v15  ;;  %v1243_v14 = vmax.f32 %v1225_v13, 0.0 }
 0x260   : > { %v1235_v19 = vmax.f32 %v1185_v8, 0.0  ;;  %v1242_v23 = vmax.f32 %v1220_v18, 0.0 }
 0x261   : > { %v1234_v22 = vmax.f32 %v1180_v17, 0.0  ;;  %1259 = vst [vmem:[%s2302_s7 + $0x78] sm:$0xff] %v1243_v14 }
 0x262   : > { %1251 = vst [vmem:[%s2302_s7 + $0x38] sm:$0xff] %v1235_v19  ;;  %1258 = vst [vmem:[%s2302_s7 + $0x70] sm:$0xff] %v1242_v23 }
 0x263   : > { %1250 = vst [vmem:[%s2302_s7 + $0x30] sm:$0xff] %v1234_v22 }
 0x264   : > { %1663 = shalt.err (!%p1660_p3)
}
 0x265   : > { %s1664_s28 = scalar_lea.hbm %s2321_s19, 2048  ;;  %s1668_s4 = scalar_lea.hbm %s2381_s3, 4096 }
 0x266   : > { %p1665_p5 = scmp.ne.s32.totalorder %s2321_s19, %s1664_s28  ;;  %p1669_p9 = scmp.lt.u32.totalorder %s2321_s19, %s2381_s3 }
 0x267   : > { %p1670_p10 = scmp.lt.u32.totalorder %s1668_s4, %s1664_s28  ;;  %p1672_p12 = scmp.lt.u32.totalorder %s1664_s28, %s2321_s19 }
 0x268   : > { %p1666_p6 = pnand %p1665_p5, %p1800_p4 }
 0x269   : > { %p1671_p11 = por %p1670_p10, %p1669_p9 }
 0x26a   : > { %p1667_p7 = pneg %p1666_p6 }
 0x26b   : > { %p1673_p13 = por %p1672_p12, %p1671_p11 }
 0x26d   : > { %p1674_p0 = pnand %p1673_p13, %p1667_p7 }
 0x26f   : > { %1677 = shalt.err (!%p1674_p0)
}
 0x270   : > { %s1739_s7 = smov 128  }
 0x271   : > { %1586 = dma.vmem_to_hbm [thread:$0]  (%p1800_p4), %s2323_s9, 2048, %s2321_s19, %s2331_s15, %s1739_s7, %s1739_s7, %s1730_s30  }
 0x272 PF: > { %p1592_p1 = scmp.ge.s32.totalorder %s1728_s17, 2  ;;  %s1291_s8 = sand.u32 1, %s1708_s12  }
 0x273   : > { %s1292_s11 = scalar_lea.sflag [#allocation4], %s1291_s8 }
 0x274   : > { %p1589_p2 = pnand %p1592_p1, %p1807_p8 }
 0x276   : > { %1703 = dma.done.wait (!%p1589_p2), %s1292_s11, 2048  }
 0x277   : > { %1705 = vsyncadd (!%p1589_p2), %s1292_s11, 4294965248  ;;  %s16_s17 = sadd.s32 1, %s1728_s17   ;;  %s2384_s12 = smov %s1712_s13 }
 0x278   : > { %p13_p3 = scmp.ge.s32.totalorder %s16_s17, 4   ;;  %s2385_s13 = smov %s1716_s14 }
 0x279   : > { %s2386_s14 = smov %s1813_s25  ;;  %s2387_s15 = smov %s1724_s16 }
 0x27a   : > { %s2388_s16 = smov %s2390_s20  ;;  %15 = sbr.rel (!%p13_p3) target bundleno = 4 (0x4), region = 70 }
 0x281   :  { %1297 = vsyncpa [#allocation4], 1 }
 0x282   :  { %1299 = vsyncpa [#allocation4 + $0x1], 1 }

</bundles_post_ra>
